<compile_context>
chip_gen: v7x
topology: tpu7x:2x2x1
jax: 0.10.0
libtpu: 0.0.40
codegen_flags: <defaults>
</compile_context>

<pallas_src>
import functools

import jax
import jax.numpy as jnp
import numpy as np
from jax import lax
from jax.experimental import pallas as pl
from jax.experimental.pallas import tpu as pltpu


def _round_up(x, m):
    return ((x + m - 1) // m) * m


def _cdiv(a, b):
    return (a + b - 1) // b


# ----------------------------------------------------------------------------
# Fused Pallas kernel: one grid step = one image.
# Layout: channel-major; flattened (phase-decomposed, zero-padded) spatial on the lane axis.
#   x_ref   : (1, Cin, n_phase*phase_w)   phase slabs, each 128-aligned & lane-padded
#   mask_ref: (1, n_phase*phase_w)        1.0 at interior pixels, 0.0 on halo / padding
#   w1t_ref : (Ce, Cin)                   expand weights, BN1 scale folded (transposed)
#   b1_ref  : (Ce, 1)
#   w2_ref  : (k*k, Ce, 1)                depthwise weights, BN2 scale folded
#   b2_ref  : (Ce, 1)
#   wpt_ref : (Cout, Ce[+Cin])            project (+ fused conv-shortcut) weights, BN folded
#   bp_ref  : (Cout, 1)                   b3 (+ bsc)
#   o_ref   : (1, Cout, lo_pad)           output origins t = io*Wq + jo   (lane-dense store)
# ----------------------------------------------------------------------------
def _fused_block_kernel(x_ref, mask_ref, w1t_ref, b1_ref, w2_ref, b2_ref,
                        wpt_ref, bp_ref, o_ref, *,
                        k, stride, Wq, phase_w, lo_pad, sc_off, shortcut):
    acc = None
    # Process one phase plane at a time (stride==1 -> single phase): bounds liveness and makes
    # every depthwise tap a static lane-slice of the register-resident expand output.
    for rh in range(stride):
        for rw in range(stride):
            base = (rh * stride + rw) * phase_w
            xph = x_ref[0, :, base:base + phase_w]                 # (Cin, phase_w), aligned
            # expand 1x1 conv (+BN folded) + bias + ReLU, then zero the halo/padding so the
            # depthwise sees proper zero padding of *its* input.
            h1 = jnp.dot(w1t_ref[...], xph, preferred_element_type=jnp.float32)
            h1 = jnp.maximum(h1 + b1_ref[...], 0.0)
            h1 = h1 * mask_ref[:, base:base + phase_w]
            # depthwise taps belonging to this phase: kh = stride*qh + rh, kw = stride*qw + rw
            for qh in range(_cdiv(k - rh, stride)):
                for qw in range(_cdiv(k - rw, stride)):
                    kh = stride * qh + rh
                    kw = stride * qw + rw
                    d = qh * Wq + qw                               # unit-stride lane shift
                    tap = h1[:, d:d + lo_pad] * w2_ref[kh * k + kw]
                    acc = tap if acc is None else acc + tap
    h2 = jnp.maximum(acc + b2_ref[...], 0.0)                       # (Ce, lo_pad)

    # project 1x1 conv (+BN) with the conv shortcut fused into the same matmul.
    if shortcut == "conv":
        xs = x_ref[0, :, sc_off:sc_off + lo_pad]                   # x at the output origins
        rhs = jnp.concatenate([h2, xs], axis=0)                    # (Ce+Cin, lo_pad)
    else:
        rhs = h2
    y = jnp.dot(wpt_ref[...], rhs, preferred_element_type=jnp.float32) + bp_ref[...]
    if shortcut == "identity":
        y = y + x_ref[0, :, sc_off:sc_off + lo_pad]                # plain residual add
    o_ref[0] = y.astype(o_ref.dtype)


# ----------------------------------------------------------------------------
# Wrapper: BN folding, phase decomposition / padding, pallas_call, un-flattening.
# ----------------------------------------------------------------------------
def fold_bn(gamma, beta, mean, var, eps=1e-5):
    scale = gamma / jnp.sqrt(var + eps)
    bias = beta - mean * scale
    return scale, bias


def block_forward(x_nchw, params, *, kernel_size, stride, in_size, expand_size, out_size):
    N, Cin, H, W = x_nchw.shape
    assert Cin == in_size
    k, s = kernel_size, stride
    p = k // 2
    Hp, Wp = H + 2 * p, W + 2 * p
    Hq, Wq = _cdiv(Hp, s), _cdiv(Wp, s)              # per-phase (space-to-depth) grid
    Ho = (Hp - k) // s + 1
    Wo = (Wp - k) // s + 1
    lo = Ho * Wq                                     # output origins t = io*Wq + jo (jo<Wo valid)
    lo_pad = _round_up(lo, 128)                      # lane-dense output store
    d_max = ((k - 1) // s) * Wq + (k - 1) // s       # largest in-phase tap shift
    sc_off = (p * Wq + p) if s == 1 else 0           # shortcut reads x at the output origins
    phase_w = _round_up(max(Hq * Wq, d_max + lo_pad, sc_off + lo_pad), 128)
    n_phase = s * s
    tot = n_phase * phase_w

    # ---- fold BN (inference) into weights / biases at trace time (tiny XLA ops) ----------
    s1, b1 = fold_bn(*params["bn1"])
    w1t = (params["w1"] * s1[None, :]).T                          # (Ce, Cin)
    s2, b2 = fold_bn(*params["bn2"])
    w2f = (params["w2"] * s2[None, None, :]).reshape(k * k, expand_size, 1)
    s3, b3 = fold_bn(*params["bn3"])
    w3t = (params["w3"] * s3[None, :]).T                          # (Cout, Ce)

    if s == 1:
        shortcut = "conv" if in_size != out_size else "identity"
    else:
        shortcut = "none"
    if shortcut == "conv":
        ssc, bsc = fold_bn(*params["bn_sc"])
        wsct = (params["w_sc"] * ssc[None, :]).T                  # (Cout, Cin)
        wpt = jnp.concatenate([w3t, wsct], axis=1)                # fused project|shortcut weights
        bp = b3 + bsc
    else:
        wpt = w3t
        bp = b3

    # ---- pad the (small) input spatially and space-to-depth it into phase slabs ----------
    xp = jnp.pad(x_nchw, ((0, 0), (0, 0), (p, p), (p, p)))        # (N, Cin, Hp, Wp)
    slabs, masks = [], []
    for rh in range(s):
        for rw in range(s):
            plane = xp[:, :, rh::s, rw::s]                        # (N, Cin, hq, wq)
            hq, wq = plane.shape[2], plane.shape[3]
            plane = jnp.pad(plane, ((0, 0), (0, 0), (0, Hq - hq), (0, Wq - wq)))
            flat = plane.reshape(N, Cin, Hq * Wq)
            flat = jnp.pad(flat, ((0, 0), (0, 0), (0, phase_w - Hq * Wq)))
            slabs.append(flat)
            rows = rh + s * np.arange(Hq)
            cols = rw + s * np.arange(Wq)
            m = (((rows >= p) & (rows < p + H))[:, None]
                 & ((cols >= p) & (cols < p + W))[None, :]).astype(np.float32)
            masks.append(np.pad(m.reshape(-1), (0, phase_w - Hq * Wq)))
    x_in = jnp.concatenate(slabs, axis=2) if n_phase > 1 else slabs[0]   # (N, Cin, tot)
    mask = jnp.asarray(np.concatenate(masks), dtype=jnp.float32)[None, :]  # (1, tot)

    kern = functools.partial(_fused_block_kernel, k=k, stride=s, Wq=Wq,
                             phase_w=phase_w, lo_pad=lo_pad, sc_off=sc_off,
                             shortcut=shortcut)
    kproj = wpt.shape[1]

    operands = [x_in, mask, w1t, b1.reshape(-1, 1), w2f, b2.reshape(-1, 1),
                wpt, bp.reshape(-1, 1)]
    in_specs = [
        pl.BlockSpec((1, Cin, tot), lambda n: (n, 0, 0)),
        pl.BlockSpec((1, tot), lambda n: (0, 0)),
        pl.BlockSpec((expand_size, Cin), lambda n: (0, 0)),
        pl.BlockSpec((expand_size, 1), lambda n: (0, 0)),
        pl.BlockSpec((k * k, expand_size, 1), lambda n: (0, 0, 0)),
        pl.BlockSpec((expand_size, 1), lambda n: (0, 0)),
        pl.BlockSpec((out_size, kproj), lambda n: (0, 0)),
        pl.BlockSpec((out_size, 1), lambda n: (0, 0)),
    ]

    out_flat = pl.pallas_call(
        kern,
        out_shape=jax.ShapeDtypeStruct((N, out_size, lo_pad), x_nchw.dtype),
        grid=(N,),
        in_specs=in_specs,
        out_specs=pl.BlockSpec((1, out_size, lo_pad), lambda n: (n, 0, 0)),
        compiler_params=pltpu.CompilerParams(
            dimension_semantics=("parallel",),
            vmem_limit_bytes=32 * 1024 * 1024),
    )(*operands)

    # ---- epilogue: static slices + reshape only (origins t = io*Wq + jo; jo >= Wo discarded)
    out = out_flat[:, :, :lo].reshape(N, out_size, Ho, Wq)[:, :, :, :Wo]
    return out
    # TODO(synk): semodule (SE block) is None in this configuration; if required it would be a
    #             global-avg-pool + 2 FC + gating stage fused after the depthwise output.


# ----------------------------------------------------------------------------
# Pure-JAX reference (for correctness check)
# ----------------------------------------------------------------------------
def block_forward_ref(x_nchw, params, *, kernel_size, stride, in_size, expand_size, out_size):
    p = kernel_size // 2
    x = jnp.transpose(x_nchw, (0, 2, 3, 1))
    dn = ("NHWC", "HWIO", "NHWC")

    s1, b1 = fold_bn(*params["bn1"])
    y = lax.conv_general_dilated(x, params["w1"].reshape(1, 1, in_size, expand_size),
                                 (1, 1), "VALID", dimension_numbers=dn)
    y = jnp.maximum(y * s1 + b1, 0.0)

    s2, b2 = fold_bn(*params["bn2"])
    y = lax.conv_general_dilated(y, params["w2"].reshape(kernel_size, kernel_size, 1, expand_size),
                                 (stride, stride), [(p, p), (p, p)],
                                 feature_group_count=expand_size, dimension_numbers=dn)
    y = jnp.maximum(y * s2 + b2, 0.0)

    s3, b3 = fold_bn(*params["bn3"])
    y = lax.conv_general_dilated(y, params["w3"].reshape(1, 1, expand_size, out_size),
                                 (1, 1), "VALID", dimension_numbers=dn)
    y = y * s3 + b3

    if stride == 1:
        if in_size != out_size:
            ssc, bsc = fold_bn(*params["bn_sc"])
            sc = lax.conv_general_dilated(x, params["w_sc"].reshape(1, 1, in_size, out_size),
                                          (1, 1), "VALID", dimension_numbers=dn)
            sc = sc * ssc + bsc
        else:
            sc = x
        y = y + sc
    return jnp.transpose(y, (0, 3, 1, 2))


# ----------------------------------------------------------------------------
# Deterministic parameter construction
# ----------------------------------------------------------------------------
def make_params(key, in_size, expand_size, out_size, kernel_size, stride):
    ks = jax.random.split(key, 4)

    def bn_params(c, seed):
        i = jnp.arange(c, dtype=jnp.float32)
        gamma = 1.0 + 0.1 * jnp.cos(i + seed)
        beta = 0.05 * jnp.sin(0.7 * i + seed)
        mean = 0.02 * jnp.cos(1.3 * i + seed)
        var = 1.0 + 0.1 * jnp.sin(0.5 * i + seed) ** 2
        return (gamma, beta, mean, var)

    params = {
        # 1x1 conv weights stored as (C_in, C_out) == PyTorch (out,in,1,1) transposed.
        "w1": 0.1 * jax.random.normal(ks[0], (in_size, expand_size), jnp.float32),
        "bn1": bn_params(expand_size, 1.0),
        # depthwise weights stored as (k, k, C) == PyTorch (C,1,k,k) permuted.
        "w2": 0.1 * jax.random.normal(ks[1], (kernel_size, kernel_size, expand_size), jnp.float32),
        "bn2": bn_params(expand_size, 2.0),
        "w3": 0.1 * jax.random.normal(ks[2], (expand_size, out_size), jnp.float32),
        "bn3": bn_params(out_size, 3.0),
    }
    if stride == 1 and in_size != out_size:
        params["w_sc"] = 0.1 * jax.random.normal(ks[3], (in_size, out_size), jnp.float32)
        params["bn_sc"] = bn_params(out_size, 4.0)
    return params


# ----------------------------------------------------------------------------
if __name__ == "__main__":
    # (kernel_size, stride, in_size, expand_size, out_size, N, H, W)
    # N=4 so the "parallel" grid has >=2 steps per TensorCore (pipeline overlap, v7x megacore).
    configs = [
        (3, 1, 8, 32, 16, 4, 16, 16),    # conv+BN shortcut (in != out)   -- primary config
        (3, 1, 16, 48, 16, 4, 16, 16),   # identity shortcut (in == out)
        (3, 2, 8, 32, 24, 4, 16, 16),    # stride 2: strided origins computed in-kernel
    ]
    for (ksz, stride, cin, ce, cout, N, H, W) in configs:
        root = jax.random.PRNGKey(0)
        kx, kp = jax.random.split(root)
        x = jax.random.normal(kx, (N, cin, H, W), jnp.float32)    # NCHW, like PyTorch
        params = make_params(kp, cin, ce, cout, ksz, stride)

        fwd = jax.jit(functools.partial(
            block_forward, kernel_size=ksz, stride=stride,
            in_size=cin, expand_size=ce, out_size=cout))
        out = jax.block_until_ready(fwd(x, params))

        ref = block_forward_ref(x, params, kernel_size=ksz, stride=stride,
                                in_size=cin, expand_size=ce, out_size=cout)
        np.testing.assert_allclose(np.asarray(out), np.asarray(ref), rtol=1e-4, atol=1e-4)
        p = ksz // 2
        Ho = (H + 2 * p - ksz) // stride + 1
        Wo = (W + 2 * p - ksz) // stride + 1
        assert out.shape == (N, cout, Ho, Wo)

    print("KERNEL_OK")
</pallas_src>

<mosaic_0001>
module attributes {stable_mosaic.version = 11 : i64} {
  func.func @_fused_block_kernel(%arg0: i32, %arg1: memref<1x8x512xf32, #tpu.memory_space<vmem>>, %arg2: memref<1x512xf32, #tpu.memory_space<vmem>>, %arg3: memref<32x8xf32, #tpu.memory_space<vmem>>, %arg4: memref<32x1xf32, #tpu.memory_space<vmem>>, %arg5: memref<9x32x1xf32, #tpu.memory_space<vmem>>, %arg6: memref<32x1xf32, #tpu.memory_space<vmem>>, %arg7: memref<16x40xf32, #tpu.memory_space<vmem>>, %arg8: memref<16x1xf32, #tpu.memory_space<vmem>>, %arg9: memref<1x16x384xf32, #tpu.memory_space<vmem>>) attributes {dimension_semantics = [#tpu.dimension_semantics<parallel>], iteration_bounds = array<i64: 4>, scalar_prefetch = 0 : i64, scratch_operands = 0 : i64, tpu.core_type = #tpu.core_type<tc>, window_params = [{transform_indices = @transform_0, window_bounds = array<i64: 1, 8, 512>}, {pipeline_mode = #tpu.pipeline_mode<synchronous>, transform_indices = @transform_1, window_bounds = array<i64: 1, 512>}, {pipeline_mode = #tpu.pipeline_mode<synchronous>, transform_indices = @transform_2, window_bounds = array<i64: 32, 8>}, {pipeline_mode = #tpu.pipeline_mode<synchronous>, transform_indices = @transform_3, window_bounds = array<i64: 32, 1>}, {pipeline_mode = #tpu.pipeline_mode<synchronous>, transform_indices = @transform_4, window_bounds = array<i64: 9, 32, 1>}, {pipeline_mode = #tpu.pipeline_mode<synchronous>, transform_indices = @transform_5, window_bounds = array<i64: 32, 1>}, {pipeline_mode = #tpu.pipeline_mode<synchronous>, transform_indices = @transform_6, window_bounds = array<i64: 16, 40>}, {pipeline_mode = #tpu.pipeline_mode<synchronous>, transform_indices = @transform_7, window_bounds = array<i64: 16, 1>}, {transform_indices = @transform_8, window_bounds = array<i64: 1, 16, 384>}]} {
    %c0 = arith.constant 0 : index
    %c0_0 = arith.constant 0 : index
    %c0_1 = arith.constant 0 : index
    %0 = vector.load %arg1[%c0, %c0_0, %c0_1] : memref<1x8x512xf32, #tpu.memory_space<vmem>>, vector<1x8x512xf32>
    %1 = vector.shape_cast %0 : vector<1x8x512xf32> to vector<8x512xf32>
    %c0_2 = arith.constant 0 : index
    %c0_3 = arith.constant 0 : index
    %2 = vector.load %arg3[%c0_2, %c0_3] : memref<32x8xf32, #tpu.memory_space<vmem>>, vector<32x8xf32>
    %cst = arith.constant dense<0.000000e+00> : vector<32x512xf32>
    %3 = tpu.matmul %2, %1, %cst {dimension_numbers = #tpu.dot_dimension_numbers<[1], [0], [0], [1], [0, 0, 1, 1], [], []>} : vector<32x8xf32>, vector<8x512xf32>, vector<32x512xf32> -> vector<32x512xf32>
    %c0_4 = arith.constant 0 : index
    %c0_5 = arith.constant 0 : index
    %4 = vector.load %arg4[%c0_4, %c0_5] : memref<32x1xf32, #tpu.memory_space<vmem>>, vector<32x1xf32>
    %5 = vector.broadcast %4 : vector<32x1xf32> to vector<32x512xf32>
    %6 = arith.addf %3, %5 : vector<32x512xf32>
    %cst_6 = arith.constant 0.000000e+00 : f32
    %7 = vector.broadcast %cst_6 : f32 to vector<32x512xf32>
    %8 = arith.maximumf %6, %7 : vector<32x512xf32>
    %c0_7 = arith.constant 0 : index
    %c0_8 = arith.constant 0 : index
    %9 = vector.load %arg2[%c0_7, %c0_8] : memref<1x512xf32, #tpu.memory_space<vmem>>, vector<1x512xf32>
    %10 = vector.broadcast %9 : vector<1x512xf32> to vector<32x512xf32>
    %11 = arith.mulf %8, %10 : vector<32x512xf32>
    %12 = vector.extract_strided_slice %11 {offsets = [0, 0], sizes = [32, 384], strides = [1, 1]} : vector<32x512xf32> to vector<32x384xf32>
    %c0_9 = arith.constant 0 : index
    %c0_10 = arith.constant 0 : index
    %c0_11 = arith.constant 0 : index
    %13 = vector.load %arg5[%c0_9, %c0_10, %c0_11] : memref<9x32x1xf32, #tpu.memory_space<vmem>>, vector<1x32x1xf32>
    %14 = vector.shape_cast %13 : vector<1x32x1xf32> to vector<32x1xf32>
    %15 = vector.broadcast %14 : vector<32x1xf32> to vector<32x384xf32>
    %16 = arith.mulf %12, %15 : vector<32x384xf32>
    %17 = vector.extract_strided_slice %11 {offsets = [0, 1], sizes = [32, 384], strides = [1, 1]} : vector<32x512xf32> to vector<32x384xf32>
    %c1 = arith.constant 1 : index
    %c0_12 = arith.constant 0 : index
    %c0_13 = arith.constant 0 : index
    %18 = vector.load %arg5[%c1, %c0_12, %c0_13] : memref<9x32x1xf32, #tpu.memory_space<vmem>>, vector<1x32x1xf32>
    %19 = vector.shape_cast %18 : vector<1x32x1xf32> to vector<32x1xf32>
    %20 = vector.broadcast %19 : vector<32x1xf32> to vector<32x384xf32>
    %21 = arith.mulf %17, %20 : vector<32x384xf32>
    %22 = arith.addf %16, %21 : vector<32x384xf32>
    %23 = vector.extract_strided_slice %11 {offsets = [0, 2], sizes = [32, 384], strides = [1, 1]} : vector<32x512xf32> to vector<32x384xf32>
    %c2 = arith.constant 2 : index
    %c0_14 = arith.constant 0 : index
    %c0_15 = arith.constant 0 : index
    %24 = vector.load %arg5[%c2, %c0_14, %c0_15] : memref<9x32x1xf32, #tpu.memory_space<vmem>>, vector<1x32x1xf32>
    %25 = vector.shape_cast %24 : vector<1x32x1xf32> to vector<32x1xf32>
    %26 = vector.broadcast %25 : vector<32x1xf32> to vector<32x384xf32>
    %27 = arith.mulf %23, %26 : vector<32x384xf32>
    %28 = arith.addf %22, %27 : vector<32x384xf32>
    %29 = vector.extract_strided_slice %11 {offsets = [0, 18], sizes = [32, 384], strides = [1, 1]} : vector<32x512xf32> to vector<32x384xf32>
    %c3 = arith.constant 3 : index
    %c0_16 = arith.constant 0 : index
    %c0_17 = arith.constant 0 : index
    %30 = vector.load %arg5[%c3, %c0_16, %c0_17] : memref<9x32x1xf32, #tpu.memory_space<vmem>>, vector<1x32x1xf32>
    %31 = vector.shape_cast %30 : vector<1x32x1xf32> to vector<32x1xf32>
    %32 = vector.broadcast %31 : vector<32x1xf32> to vector<32x384xf32>
    %33 = arith.mulf %29, %32 : vector<32x384xf32>
    %34 = arith.addf %28, %33 : vector<32x384xf32>
    %35 = vector.extract_strided_slice %11 {offsets = [0, 19], sizes = [32, 384], strides = [1, 1]} : vector<32x512xf32> to vector<32x384xf32>
    %c4 = arith.constant 4 : index
    %c0_18 = arith.constant 0 : index
    %c0_19 = arith.constant 0 : index
    %36 = vector.load %arg5[%c4, %c0_18, %c0_19] : memref<9x32x1xf32, #tpu.memory_space<vmem>>, vector<1x32x1xf32>
    %37 = vector.shape_cast %36 : vector<1x32x1xf32> to vector<32x1xf32>
    %38 = vector.broadcast %37 : vector<32x1xf32> to vector<32x384xf32>
    %39 = arith.mulf %35, %38 : vector<32x384xf32>
    %40 = arith.addf %34, %39 : vector<32x384xf32>
    %41 = vector.extract_strided_slice %11 {offsets = [0, 20], sizes = [32, 384], strides = [1, 1]} : vector<32x512xf32> to vector<32x384xf32>
    %c5 = arith.constant 5 : index
    %c0_20 = arith.constant 0 : index
    %c0_21 = arith.constant 0 : index
    %42 = vector.load %arg5[%c5, %c0_20, %c0_21] : memref<9x32x1xf32, #tpu.memory_space<vmem>>, vector<1x32x1xf32>
    %43 = vector.shape_cast %42 : vector<1x32x1xf32> to vector<32x1xf32>
    %44 = vector.broadcast %43 : vector<32x1xf32> to vector<32x384xf32>
    %45 = arith.mulf %41, %44 : vector<32x384xf32>
    %46 = arith.addf %40, %45 : vector<32x384xf32>
    %47 = vector.extract_strided_slice %11 {offsets = [0, 36], sizes = [32, 384], strides = [1, 1]} : vector<32x512xf32> to vector<32x384xf32>
    %c6 = arith.constant 6 : index
    %c0_22 = arith.constant 0 : index
    %c0_23 = arith.constant 0 : index
    %48 = vector.load %arg5[%c6, %c0_22, %c0_23] : memref<9x32x1xf32, #tpu.memory_space<vmem>>, vector<1x32x1xf32>
    %49 = vector.shape_cast %48 : vector<1x32x1xf32> to vector<32x1xf32>
    %50 = vector.broadcast %49 : vector<32x1xf32> to vector<32x384xf32>
    %51 = arith.mulf %47, %50 : vector<32x384xf32>
    %52 = arith.addf %46, %51 : vector<32x384xf32>
    %53 = vector.extract_strided_slice %11 {offsets = [0, 37], sizes = [32, 384], strides = [1, 1]} : vector<32x512xf32> to vector<32x384xf32>
    %c7 = arith.constant 7 : index
    %c0_24 = arith.constant 0 : index
    %c0_25 = arith.constant 0 : index
    %54 = vector.load %arg5[%c7, %c0_24, %c0_25] : memref<9x32x1xf32, #tpu.memory_space<vmem>>, vector<1x32x1xf32>
    %55 = vector.shape_cast %54 : vector<1x32x1xf32> to vector<32x1xf32>
    %56 = vector.broadcast %55 : vector<32x1xf32> to vector<32x384xf32>
    %57 = arith.mulf %53, %56 : vector<32x384xf32>
    %58 = arith.addf %52, %57 : vector<32x384xf32>
    %59 = vector.extract_strided_slice %11 {offsets = [0, 38], sizes = [32, 384], strides = [1, 1]} : vector<32x512xf32> to vector<32x384xf32>
    %c8 = arith.constant 8 : index
    %c0_26 = arith.constant 0 : index
    %c0_27 = arith.constant 0 : index
    %60 = vector.load %arg5[%c8, %c0_26, %c0_27] : memref<9x32x1xf32, #tpu.memory_space<vmem>>, vector<1x32x1xf32>
    %61 = vector.shape_cast %60 : vector<1x32x1xf32> to vector<32x1xf32>
    %62 = vector.broadcast %61 : vector<32x1xf32> to vector<32x384xf32>
    %63 = arith.mulf %59, %62 : vector<32x384xf32>
    %64 = arith.addf %58, %63 : vector<32x384xf32>
    %c0_28 = arith.constant 0 : index
    %c0_29 = arith.constant 0 : index
    %65 = vector.load %arg6[%c0_28, %c0_29] : memref<32x1xf32, #tpu.memory_space<vmem>>, vector<32x1xf32>
    %66 = vector.broadcast %65 : vector<32x1xf32> to vector<32x384xf32>
    %67 = arith.addf %64, %66 : vector<32x384xf32>
    %cst_30 = arith.constant 0.000000e+00 : f32
    %68 = vector.broadcast %cst_30 : f32 to vector<32x384xf32>
    %69 = arith.maximumf %67, %68 : vector<32x384xf32>
    %c0_31 = arith.constant 0 : index
    %c0_32 = arith.constant 0 : index
    %c19 = arith.constant 19 : index
    %70 = vector.load %arg1[%c0_31, %c0_32, %c19] : memref<1x8x512xf32, #tpu.memory_space<vmem>>, vector<1x8x384xf32>
    %71 = vector.shape_cast %70 : vector<1x8x384xf32> to vector<8x384xf32>
    %72 = tpu.concatenate %69, %71 in 0 : vector<32x384xf32>, vector<8x384xf32> -> vector<40x384xf32>
    %c0_33 = arith.constant 0 : index
    %c0_34 = arith.constant 0 : index
    %73 = vector.load %arg7[%c0_33, %c0_34] : memref<16x40xf32, #tpu.memory_space<vmem>>, vector<16x40xf32>
    %cst_35 = arith.constant dense<0.000000e+00> : vector<16x384xf32>
    %74 = tpu.matmul %73, %72, %cst_35 {dimension_numbers = #tpu.dot_dimension_numbers<[1], [0], [0], [1], [0, 0, 1, 1], [], []>} : vector<16x40xf32>, vector<40x384xf32>, vector<16x384xf32> -> vector<16x384xf32>
    %c0_36 = arith.constant 0 : index
    %c0_37 = arith.constant 0 : index
    %75 = vector.load %arg8[%c0_36, %c0_37] : memref<16x1xf32, #tpu.memory_space<vmem>>, vector<16x1xf32>
    %76 = vector.broadcast %75 : vector<16x1xf32> to vector<16x384xf32>
    %77 = arith.addf %74, %76 : vector<16x384xf32>
    %c0_38 = arith.constant 0 : index
    %c0_39 = arith.constant 0 : index
    %c0_40 = arith.constant 0 : index
    %78 = vector.load %arg9[%c0_38, %c0_39, %c0_40] : memref<1x16x384xf32, #tpu.memory_space<vmem>>, vector<1x16x384xf32>
    %79 = vector.shape_cast %78 : vector<1x16x384xf32> to vector<16x384xf32>
    %80 = vector.shape_cast %77 : vector<16x384xf32> to vector<1x16x384xf32>
    tpu.vector_store %arg9[%c0_38, %c0_39, %c0_40], %80 {strides = array<i32>} : memref<1x16x384xf32, #tpu.memory_space<vmem>>, vector<1x16x384xf32>,
    return
  }
  func.func @transform_0(%arg0: i32) -> (i32, i32, i32) {
    %c0_i32 = arith.constant 0 : i32
    %c0_i32_0 = arith.constant 0 : i32
    %c0_i32_1 = arith.constant 0 : i32
    return %arg0, %c0_i32, %c0_i32_0 : i32, i32, i32
  }
  func.func @transform_1(%arg0: i32) -> (i32, i32) {
    %c0_i32 = arith.constant 0 : i32
    %c0_i32_0 = arith.constant 0 : i32
    %c0_i32_1 = arith.constant 0 : i32
    return %c0_i32, %c0_i32_0 : i32, i32
  }
  func.func @transform_2(%arg0: i32) -> (i32, i32) {
    %c0_i32 = arith.constant 0 : i32
    %c0_i32_0 = arith.constant 0 : i32
    %c0_i32_1 = arith.constant 0 : i32
    return %c0_i32, %c0_i32_0 : i32, i32
  }
  func.func @transform_3(%arg0: i32) -> (i32, i32) {
    %c0_i32 = arith.constant 0 : i32
    %c0_i32_0 = arith.constant 0 : i32
    %c0_i32_1 = arith.constant 0 : i32
    return %c0_i32, %c0_i32_0 : i32, i32
  }
  func.func @transform_4(%arg0: i32) -> (i32, i32, i32) {
    %c0_i32 = arith.constant 0 : i32
    %c0_i32_0 = arith.constant 0 : i32
    %c0_i32_1 = arith.constant 0 : i32
    %c0_i32_2 = arith.constant 0 : i32
    return %c0_i32, %c0_i32_0, %c0_i32_1 : i32, i32, i32
  }
  func.func @transform_5(%arg0: i32) -> (i32, i32) {
    %c0_i32 = arith.constant 0 : i32
    %c0_i32_0 = arith.constant 0 : i32
    %c0_i32_1 = arith.constant 0 : i32
    return %c0_i32, %c0_i32_0 : i32, i32
  }
  func.func @transform_6(%arg0: i32) -> (i32, i32) {
    %c0_i32 = arith.constant 0 : i32
    %c0_i32_0 = arith.constant 0 : i32
    %c0_i32_1 = arith.constant 0 : i32
    return %c0_i32, %c0_i32_0 : i32, i32
  }
  func.func @transform_7(%arg0: i32) -> (i32, i32) {
    %c0_i32 = arith.constant 0 : i32
    %c0_i32_0 = arith.constant 0 : i32
    %c0_i32_1 = arith.constant 0 : i32
    return %c0_i32, %c0_i32_0 : i32, i32
  }
  func.func @transform_8(%arg0: i32) -> (i32, i32, i32) {
    %c0_i32 = arith.constant 0 : i32
    %c0_i32_0 = arith.constant 0 : i32
    %c0_i32_1 = arith.constant 0 : i32
    return %arg0, %c0_i32, %c0_i32_0 : i32, i32, i32
  }
}

</mosaic_0001>

<bundles_post_ra>
// kernel: block_forward.1
= control target key start
LH: loop header
LB: loop body
LE: loop exit
PB: predicated region body
PF: predicated region fallthrough
CT: control target
= control target key end

     0   :  { %s2106_s27 = smov 0   ;;  %s3231_s0 = inlined_call_operand.vmem [shape: f32[4,8,512], index: 0, kind: input, shape index: {}]   ;;  %s3232_s1 = inlined_call_operand.vmem [shape: f32[1,512], index: 1, kind: input, shape index: {}]   ;;  %s3233_s2 = inlined_call_operand.vmem [shape: f32[32,8], index: 2, kind: input, shape index: {}]   ;;  %s3234_s3 = inlined_call_operand.vmem [shape: f32[32,1], index: 3, kind: input, shape index: {}]   ;;  %s3235_s4 = inlined_call_operand.vmem [shape: f32[9,32,1], index: 4, kind: input, shape index: {}]   ;;  %s3236_s5 = inlined_call_operand.vmem [shape: f32[32,1], index: 5, kind: input, shape index: {}]   ;;  %s3237_s6 = inlined_call_operand.vmem [shape: f32[16,40], index: 6, kind: input, shape index: {}]   ;;  %s3238_s7 = inlined_call_operand.vmem [shape: f32[16,1], index: 7, kind: input, shape index: {}]   ;;  %s3239_s8 = inlined_call_operand.vmem [shape: f32[4,16,384], index: 8, kind: output, shape index: {}]  }
   0x1 LB: > { %s1927_s28 = sadd.s32 4294967295, %s2049_s27   ;;  %p1931_p0 = scmp.ge.s32.totalorder %s2049_s27, 1  ;;  %s2049_s27 = sphi %s2106_s27, %s18_s27  }
   0x2   : > { %p262_p1 = scmp.lt.s32.totalorder %s2049_s27, 5 }
   0x4   : > { %p263_p2 = pnand %p1931_p0, %p262_p1 }
   0x6   : > { %266 = sbr.rel (%p263_p2) target bundleno = 858 (0x35a), region = 52 }
   0xd   : > { %v316_v0 = vld [vmem:[%s3234_s3 + $0x10] sm:$0xff]  ;;  %v314_v1 = vld [vmem:[%s3234_s3] sm:$0xff]  ;;  %p296_p3 = scmp.lt.s32.totalorder %s1927_s28, 3  ;;  %v2051_v2 = vmov 0   ;;  %v317_v3 = vld [vmem:[%s3234_s3 + $0x18] sm:$0xff]  ;;  %v3240_v5 = vmov 0.0   ;;  %v547_v62 = vlaneseq }
   0xe   : > { %2038 = vset.pattern.permute.xlu1 %v2051_v2  ;;  %2037 = vset.pattern.permute.xlu0 %v2051_v2  ;;  %v315_v4 = vld [vmem:[%s3234_s3 + $0x8] sm:$0xff]  ;;  %v310_v6 = vld [vmem:[%s3233_s2] sm:$0xff]  ;;  %vm338_vm0 = vcmask 64512   ;;  %v586_v14 = vld [vmem:[%s3235_s4 + $0x18] sm:$0xff]  ;;  %s2053_s9 = smov 126   ;;  %s2054_s10 = smov 127  }
   0xf   : > { %330 = vperm.xlu1 %2038, %v316_v0   ;;  %320 = vperm.xlu0 %2037, %v314_v1   ;;  %s3294_s28 = smov (!%p296_p3, %s1927_s28), 3  ;;  %v584_v11 = vld [vmem:[%s3235_s4 + $0x8] sm:$0xff]  ;;  %v583_v12 = vld [vmem:[%s3235_s4] sm:$0xff]  ;;  %v585_v15 = vld [vmem:[%s3235_s4 + $0x10] sm:$0xff]  ;;  %v548_v1 = vshrl.u32 %v547_v62, 7  ;;  %s2055_s11 = smov 110  }
  0x10   : > { %415 = vmatprep.mubr.f32.mxu0 %v3240_v5  ;;  %504 = vmatprep.mubr.f32.mxu1 %v3240_v5  ;;  %s1981_s15 = sshll.u32 %s3294_s28, 5  ;;  %v311_v13 = vld [vmem:[%s3233_s2 + $0x8] sm:$0xff]  ;;  %v312_v16 = vld [vmem:[%s3233_s2 + $0x10] sm:$0xff]  ;;  %v1943_v18 = vld [vmem:[%s3235_s4 + $0x20] sm:$0xff]  ;;  %s2056_s12 = smov 109   ;;  %vm708_vm1 = vcmask 1039360  }
  0x11   : > { %s2134_s18 = scalar_lea.vmem %s3231_s0, %s1981_s15  ;;  %v1944_v17 = vld [vmem:[%s3235_s4 + $0x28] sm:$0xff]  ;;  %v313_v19 = vld [vmem:[%s3233_s2 + $0x18] sm:$0xff]  ;;  %v1945_v21 = vld [vmem:[%s3235_s4 + $0x30] sm:$0xff]  ;;  %s2057_s13 = smov 108   ;;  %vm834_vm2 = vcmask 1031168   ;;  %vm960_vm3 = vcmask 900096  }
  0x12   : > { %v307_v7 = vld [vmem:[%s2134_s18 + $0x8] sm:$0xff]  ;;  %v309_v8 = vld [vmem:[%s2134_s18 + $0x18] sm:$0xff]  ;;  %v306_v9 = vld [vmem:[%s2134_s18] sm:$0xff]  ;;  %s2058_s14 = smov 92   ;;  %s2059_s15 = smov 91   ;;  %vm1086_vm4 = vcmask 891904  }
  0x13   : > { %335 = vperm.xlu1 %2038, %v317_v3   ;;  %325 = vperm.xlu0 %2037, %v315_v4   ;;  %v308_v10 = vld [vmem:[%s2134_s18 + $0x10] sm:$0xff]  ;;  %v1946_v20 = vld [vmem:[%s3235_s4 + $0x38] sm:$0xff]  ;;  %v1947_v22 = vld [vmem:[%s3235_s4 + $0x40] sm:$0xff]  ;;  %v549_v4 = vsub.s32 0, %v548_v1  ;;  %s2060_s16 = smov 90   ;;  %vm1212_vm5 = vcmask 883712  }
  0x14   : > { %351 = vmatprep.subr.mxu0 %v307_v7  ;;  %440 = vmatprep.subr.mxu1 %v309_v8  ;;  %v1948_v23 = vld [vmem:[%s3235_s4 + $0x48] sm:$0xff]  ;;  %v1951_v24 = vld [vmem:[%s3235_s4 + $0x60] sm:$0xff]  ;;  %v1949_v26 = vld [vmem:[%s3235_s4 + $0x50] sm:$0xff]  ;;  %vm1338_vm6 = vcmask 752640   ;;  %vm1707_vm7 = vcmask 326656   ;;  %vm1464_vm8 = vcmask 744448  }
  0x15   : > { %352 = vmatpush1.msra.mxu0 %v306_v9  ;;  %441 = vmatpush1.msra.mxu1 %v308_v10  ;;  %v1952_v25 = vld [vmem:[%s3235_s4 + $0x68] sm:$0xff]  ;;  %v1950_v27 = vld [vmem:[%s3235_s4 + $0x58] sm:$0xff]  ;;  %v1955_v28 = vld [vmem:[%s3235_s4 + $0x80] sm:$0xff]  ;;  %v557_v9 = vsub.s32 2, %v548_v1  ;;  %vm1590_vm9 = vcmask 736256  }
  0x16   : > { %1935 = vmatmul.mubr.msk.f32.vlgmr.msra.gmra.mrb[0].mxu0 %vm338_vm0, %v310_v6  ;;  %1939 = vmatmul.mubr.msk.f32.vlgmr.msra.gmra.mrb[0].mxu1 %vm338_vm0, %v310_v6  ;;  %v1956_v29 = vld [vmem:[%s3235_s4 + $0x88] sm:$0xff]  ;;  %v1953_v30 = vld [vmem:[%s3235_s4 + $0x70] sm:$0xff]  ;;  %v1954_v31 = vld [vmem:[%s3235_s4 + $0x78] sm:$0xff] }
  0x17   : > { %594 = vperm.xlu1 %2038, %v584_v11   ;;  %589 = vperm.xlu0 %2037, %v583_v12   ;;  %v1959_v32 = vld [vmem:[%s3235_s4 + $0xa0] sm:$0xff]  ;;  %v1960_v33 = vld [vmem:[%s3235_s4 + $0xa8] sm:$0xff]  ;;  %v1957_v34 = vld [vmem:[%s3235_s4 + $0x90] sm:$0xff] }
  0x18   : > { %421 = vmatprep.mubr.f32.mxu0 %v3240_v5  ;;  %510 = vmatprep.mubr.f32.mxu1 %v3240_v5  ;;  %v1958_v35 = vld [vmem:[%s3235_s4 + $0x98] sm:$0xff]  ;;  %v1963_v36 = vld [vmem:[%s3235_s4 + $0xc0] sm:$0xff]  ;;  %v1964_v37 = vld [vmem:[%s3235_s4 + $0xc8] sm:$0xff] }
  0x19   : > { %v1961_v38 = vld [vmem:[%s3235_s4 + $0xb0] sm:$0xff]  ;;  %v1962_v39 = vld [vmem:[%s3235_s4 + $0xb8] sm:$0xff]  ;;  %v1967_v40 = vld [vmem:[%s3235_s4 + $0xe0] sm:$0xff] }
  0x1a   : > { %1936 = vmatmul.mubr.msk.f32.gmra.mrb[2].mxu0 %vm338_vm0, %v311_v13  ;;  %1940 = vmatmul.mubr.msk.f32.gmra.mrb[2].mxu1 %vm338_vm0, %v311_v13  ;;  %v1968_v41 = vld [vmem:[%s3235_s4 + $0xe8] sm:$0xff]  ;;  %v1965_v42 = vld [vmem:[%s3235_s4 + $0xd0] sm:$0xff]  ;;  %v1966_v43 = vld [vmem:[%s3235_s4 + $0xd8] sm:$0xff] }
  0x1b   : > { %604 = vperm.xlu1 %2038, %v586_v14   ;;  %599 = vperm.xlu0 %2037, %v585_v15   ;;  %v1971_v44 = vld [vmem:[%s3235_s4 + $0x100] sm:$0xff]  ;;  %v1972_v45 = vld [vmem:[%s3235_s4 + $0x108] sm:$0xff]  ;;  %v1969_v46 = vld [vmem:[%s3235_s4 + $0xf0] sm:$0xff] }
  0x1c   : > { %427 = vmatprep.mubr.f32.mxu0 %v3240_v5  ;;  %516 = vmatprep.mubr.f32.mxu1 %v3240_v5  ;;  %v1970_v47 = vld [vmem:[%s3235_s4 + $0xf8] sm:$0xff]  ;;  %v1973_v48 = vld [vmem:[%s3235_s4 + $0x110] sm:$0xff]  ;;  %v1628_v50 = vld [vmem:[%s3236_s5 + $0x8] sm:$0xff] }
  0x1d   : > { %v1974_v49 = vld [vmem:[%s3235_s4 + $0x118] sm:$0xff]  ;;  %v1627_v51 = vld [vmem:[%s3236_s5] sm:$0xff] }
  0x1e   : > { %1937 = vmatmul.mubr.msk.f32.gmra.mrb[4].mxu0 %vm338_vm0, %v312_v16  ;;  %1941 = vmatmul.mubr.msk.f32.gmra.mrb[4].mxu1 %vm338_vm0, %v312_v16  ;;  %v545_v6 = vld [vmem:[%s3232_s1] sm:$0xf] }
  0x1f   : > { %631 = vperm.xlu1 %2038, %v1944_v17   ;;  %626 = vperm.xlu0 %2037, %v1943_v18   ;;  %v2311_v11 = vrot.slane %v545_v6, %v549_v4 }
  0x20   : > { %433 = vmatprep.mubr.f32.mxu0 %v3240_v5  ;;  %522 = vmatprep.mubr.f32.mxu1 %v3240_v5 }
  0x22   : > { %1938 = vmatmul.mubr.msk.f32.gmra.mrb[6].mxu0 %vm338_vm0, %v313_v19  ;;  %1942 = vmatmul.mubr.msk.f32.gmra.mrb[6].mxu1 %vm338_vm0, %v313_v19  ;;  %v2320_v19 = vrot.slane %v545_v6, %v557_v9 }
  0x23   : > { %641 = vperm.xlu1 %2038, %v1946_v20   ;;  %636 = vperm.xlu0 %2037, %v1945_v21  }
  0x24   : > { %1778 = vmatprep.mubr.f32.mxu0 %v3240_v5 }
  0x27   : > { %752 = vperm.xlu1 %2038, %v1947_v22   ;;  %757 = vperm.xlu0 %2037, %v1948_v23  }
  0x2b   : > { %878 = vperm.xlu1 %2038, %v1951_v24   ;;  %883 = vperm.xlu0 %2037, %v1952_v25   ;;  %v553_v25 = vsub.s32 1, %v548_v1 }
  0x2f   : > { %762 = vperm.xlu1 %2038, %v1949_v26   ;;  %767 = vperm.xlu0 %2037, %v1950_v27  }
  0x33   : > { %1004 = vperm.xlu1 %2038, %v1955_v28   ;;  %1009 = vperm.xlu0 %2037, %v1956_v29   ;;  %v561_v29 = vsub.s32 3, %v548_v1 }
  0x37   : > { %888 = vperm.xlu1 %2038, %v1953_v30   ;;  %893 = vperm.xlu0 %2037, %v1954_v31  }
  0x3b   : > { %1130 = vperm.xlu1 %2038, %v1959_v32   ;;  %1135 = vperm.xlu0 %2037, %v1960_v33  }
  0x3f   : > { %1014 = vperm.xlu1 %2038, %v1957_v34   ;;  %1019 = vperm.xlu0 %2037, %v1958_v35  }
  0x43   : > { %1256 = vperm.xlu1 %2038, %v1963_v36   ;;  %1261 = vperm.xlu0 %2037, %v1964_v37  }
  0x47   : > { %1140 = vperm.xlu1 %2038, %v1961_v38   ;;  %1145 = vperm.xlu0 %2037, %v1962_v39  }
  0x4b   : > { %1382 = vperm.xlu1 %2038, %v1967_v40   ;;  %1387 = vperm.xlu0 %2037, %v1968_v41   ;;  %v2346_v40 = vrot.slane %v545_v6, %v553_v25 }
  0x4f   : > { %1266 = vperm.xlu1 %2038, %v1965_v42   ;;  %1271 = vperm.xlu0 %2037, %v1966_v43  }
  0x53   : > { %1508 = vperm.xlu1 %2038, %v1971_v44   ;;  %1513 = vperm.xlu0 %2037, %v1972_v45   ;;  %v2350_v44 = vrot.slane %v545_v6, %v561_v29 }
  0x57   : > { %1392 = vperm.xlu1 %2038, %v1969_v46   ;;  %1397 = vperm.xlu0 %2037, %v1970_v47  }
  0x5b   : > { %1518 = vperm.xlu1 %2038, %v1973_v48   ;;  %1523 = vperm.xlu0 %2037, %v1974_v49  }
  0x5f   : > { %1638 = vperm.xlu1 %2038, %v1628_v50   ;;  %1633 = vperm.xlu0 %2037, %v1627_v51  }
  0x8e   : > { %v331_v52 = vpop.permute.xlu1 %330  ;;  %v2291_v58 = vpop.permute.xlu0 %320 }
  0x92   : > { %v2281_v53 = vpop.permute.xlu1 %335  ;;  %v2295_v60 = vpop.permute.xlu0 %325 }
  0x96   : > { %v2283_v54 = vpop.permute.xlu1 %594  ;;  %v2299_v63 = vpop.permute.xlu0 %589 }
  0x9a   : > { %v2285_v55 = vpop.permute.xlu1 %604  ;;  %v2303_v2 = vpop.permute.xlu0 %599 }
  0x9e   : > { %v2287_v56 = vpop.permute.xlu1 %631  ;;  %v2316_v15 = vpop.permute.xlu0 %626 }
  0xa2   : > { %v2289_v57 = vpop.permute.xlu1 %641  ;;  %v2341_v36 = vpop.permute.xlu0 %636 }
  0xa6   : > { %v2293_v59 = vpop.permute.xlu1 %752  ;;  %v2375_v25 = vpop.permute.xlu0 %757 }
  0xaa   : > { %v2297_v61 = vpop.permute.xlu1 %878 }
  0xae   : > { %v2301_v0 = vpop.permute.xlu1 %762 }
  0xb2   : > { %v2305_v3 = vpop.permute.xlu1 %1004 }
  0xb6   : > { %v2318_v16 = vpop.permute.xlu1 %888 }
  0xba   : > { %v2343_v37 = vpop.permute.xlu1 %1130 }
  0xe9   : > { %v417_v7 = vpop.f32.mrb[0].mxu0  ;;  %v506_v8 = vpop.f32.mrb[0].mxu1 }
  0xea   : > { %v418_v10 = vadd.f32 %v417_v7, %v2291_v58  ;;  %v507_v12 = vadd.f32 %v506_v8, %v2291_v58  ;;  %v419_v13 = vpop.f32.mrb[1].mxu0  ;;  %v2314_v14 = vpop.f32.mrb[1].mxu1 }
  0xec   : > { %v529_v17 = vmax.f32 %v418_v10, 0.0  ;;  %v531_v18 = vmax.f32 %v507_v12, 0.0  ;;  %v420_v10 = vadd.f32 %v419_v13, %v2291_v58 }
  0xed   : > { %v2322_v20 = vpop.f32.mrb[2].mxu0  ;;  %v2324_v21 = vpop.f32.mrb[2].mxu1 }
  0xee   : > { %v2327_v22 = vmul.f32 %v2311_v11, %v529_v17  ;;  %v2329_v23 = vpop.f32.mrb[3].mxu0  ;;  %v2331_v24 = vpop.f32.mrb[3].mxu1  ;;  %v2338_v28 = vmul.f32 %v2320_v19, %v531_v18 }
  0xf0   : > { %v770_v26 = vmul.f32 %v2293_v59, %v2327_v22  ;;  %v644_v27 = vmul.f32 %v2316_v15, %v2327_v22  ;;  %v896_v43 = vmul.f32 %v2297_v61, %v2327_v22  ;;  %v646_v49 = vmul.f32 %v2316_v15, %v2338_v28 }
  0xf1   : > { %v429_v30 = vpop.f32.mrb[4].mxu0  ;;  %v518_v31 = vpop.f32.mrb[4].mxu1  ;;  %v1022_v18 = vmul.f32 %v2305_v3, %v2327_v22 }
  0xf2   : > { %v430_v32 = vadd.f32 %v429_v30, %v331_v52  ;;  %v519_v33 = vadd.f32 %v518_v31, %v331_v52  ;;  %v431_v34 = vpop.f32.mrb[5].mxu0  ;;  %v520_v35 = vpop.f32.mrb[5].mxu1  ;;  %802 = vrot.lane.b32.xlu1 %v770_v26, %s2053_s9  ;;  %676 = vrot.lane.b32.xlu0 %v644_v27, %s2054_s10  ;;  %v772_v30 = vmul.f32 %v2293_v59, %v2338_v28 }
  0xf3   : > { %v432_v38 = vadd.f32 %v431_v34, %v331_v52  ;;  %v521_v39 = vadd.f32 %v520_v35, %v331_v52  ;;  %v2377_v26 = vpop.permute.xlu1 %1014  ;;  %v509_v34 = vadd.f32 %v2314_v14, %v2291_v58  ;;  %v1150_v35 = vmul.f32 %v2343_v37, %v2338_v28 }
  0xf4   : > { %v537_v41 = vmax.f32 %v430_v32, 0.0  ;;  %v539_v42 = vmax.f32 %v519_v33, 0.0  ;;  %v530_v33 = vmax.f32 %v420_v10, 0.0  ;;  %v1024_v14 = vmul.f32 %v2305_v3, %v2338_v28 }
  0xf5   : > { %v538_v45 = vmax.f32 %v432_v38, 0.0  ;;  %v540_v46 = vmax.f32 %v521_v39, 0.0  ;;  %v435_v47 = vpop.f32.mrb[6].mxu0  ;;  %v524_v48 = vpop.f32.mrb[6].mxu1  ;;  %v898_v38 = vmul.f32 %v2297_v61, %v2338_v28 }
  0xf6   : > { %v2355_v50 = vmul.f32 %v2311_v11, %v537_v41  ;;  %v2358_v51 = vmul.f32 %v2320_v19, %v539_v42  ;;  %v436_v52 = vadd.f32 %v435_v47, %v2281_v53  ;;  %v525_v62 = vadd.f32 %v524_v48, %v2281_v53  ;;  %v437_v1 = vpop.f32.mrb[7].mxu0  ;;  %v526_v4 = vpop.f32.mrb[7].mxu1  ;;  %928 = vrot.lane.b32.xlu1 %v896_v43, %s2055_s11 }
  0xf7   : > { %v2364_v6 = vmul.f32 %v2346_v40, %v538_v45  ;;  %v2367_v7 = vmul.f32 %v2350_v44, %v540_v46  ;;  %v438_v8 = vadd.f32 %v437_v1, %v2281_v53  ;;  %v527_v9 = vadd.f32 %v526_v4, %v2281_v53  ;;  %680 = vrot.lane.b32.xlu0 %v646_v49, %s2054_s10  ;;  %v2402_v39 = vpop.permute.xlu0 %883  ;;  %v2404_v41 = vpop.permute.xlu1 %1256 }
  0xf8   : > { %v541_v12 = vmax.f32 %v436_v52, 0.0  ;;  %v543_v17 = vmax.f32 %v525_v62, 0.0  ;;  %v2408_v42 = vmul.f32 %v2346_v40, %v530_v33  ;;  %v532_v43 = vmax.f32 %v509_v34, 0.0 }
  0xf9   : > { %v542_v27 = vmax.f32 %v438_v8, 0.0  ;;  %v544_v29 = vmax.f32 %v527_v9, 0.0  ;;  %v1276_v58 = vmul.f32 %v2404_v41, %v2338_v28  ;;  %v1148_v48 = vmul.f32 %v2343_v37, %v2327_v22 }
  0xfa   : > { %v2382_v53 = vmul.f32 %v2311_v11, %v541_v12  ;;  %v2385_v31 = vmul.f32 %v2320_v19, %v543_v17  ;;  %1054 = vrot.lane.b32.xlu1 %v1022_v18, %s2056_s12  ;;  %v2417_v45 = vmul.f32 %v2350_v44, %v532_v43  ;;  %v645_v46 = vmul.f32 %v2316_v15, %v2408_v42 }
  0xfb   : > { %v2389_v13 = vmul.f32 %v2346_v40, %v542_v27  ;;  %v2392_v32 = vmul.f32 %v2350_v44, %v544_v29  ;;  %806 = vrot.lane.b32.xlu0 %v772_v30, %s2053_s9  ;;  %v2421_v47 = vpop.permute.xlu0 %767  ;;  %v1274_v52 = vmul.f32 %v2404_v41, %v2327_v22  ;;  %v771_v1 = vmul.f32 %v2293_v59, %v2408_v42 }
  0xfc   : > { %v647_v49 = vmul.f32 %v2316_v15, %v2417_v45  ;;  %v899_v4 = vmul.f32 %v2297_v61, %v2417_v45  ;;  %v513_v15 = vadd.f32 %v2324_v21, %v2295_v60  ;;  %v897_v8 = vmul.f32 %v2297_v61, %v2408_v42 }
  0xfd   : > { %v1149_v10 = vmul.f32 %v2343_v37, %v2408_v42  ;;  %v424_v12 = vadd.f32 %v2322_v20, %v2295_v60  ;;  %v773_v18 = vmul.f32 %v2293_v59, %v2417_v45  ;;  %v1025_v21 = vmul.f32 %v2305_v3, %v2417_v45 }
  0xfe   : > { %1184 = vrot.lane.b32.xlu1 %v1150_v35, %s2057_s13  ;;  %v535_v17 = vmax.f32 %v513_v15, 0.0  ;;  %v1023_v20 = vmul.f32 %v2305_v3, %v2408_v42  ;;  %v1275_v30 = vmul.f32 %v2404_v41, %v2408_v42  ;;  %v426_v3 = vadd.f32 %v2329_v23, %v2295_v60 }
  0xff   : > { %932 = vrot.lane.b32.xlu0 %v898_v38, %s2055_s11  ;;  %v2432_v62 = vpop.permute.xlu0 %1009  ;;  %v533_v27 = vmax.f32 %v424_v12, 0.0  ;;  %v515_v43 = vadd.f32 %v2331_v24, %v2295_v60 }
 0x100   : > { %v2462_v29 = vmul.f32 %v2320_v19, %v535_v17  ;;  %v1151_v19 = vmul.f32 %v2343_v37, %v2417_v45  ;;  %v534_v37 = vmax.f32 %v426_v3, 0.0 }
 0x101   : > { %v2471_v59 = vmul.f32 %v2311_v11, %v533_v27 }
 0x102   : > { %1310 = vrot.lane.b32.xlu1 %v1276_v58, %s2058_s14  ;;  %v650_v23 = vmul.f32 %v2287_v56, %v2462_v29  ;;  %v776_v60 = vmul.f32 %v2375_v25, %v2462_v29  ;;  %v1028_v15 = vmul.f32 %v2432_v62, %v2462_v29 }
 0x103   : > { %1058 = vrot.lane.b32.xlu0 %v1024_v14, %s2056_s12  ;;  %v2445_v9 = vpop.permute.xlu0 %893  ;;  %v648_v11 = vmul.f32 %v2287_v56, %v2471_v59  ;;  %v2500_v14 = vmul.f32 %v2346_v40, %v534_v37  ;;  %v774_v40 = vmul.f32 %v2375_v25, %v2471_v59  ;;  %v1026_v17 = vmul.f32 %v2432_v62, %v2471_v59 }
 0x104   : > { %v906_v37 = vmul.f32 %v2318_v16, %v2358_v51 }
 0x106   : > { %678 = vrot.lane.b32.xlu1 %v645_v46, %s2054_s10  ;;  %v536_v46 = vmax.f32 %v515_v43, 0.0  ;;  %v654_v43 = vmul.f32 %v2341_v36, %v2358_v51 }
 0x107   : > { %1180 = vrot.lane.b32.xlu0 %v1148_v48, %s2057_s13  ;;  %v2458_v61 = vpop.permute.xlu0 %1135 }
 0x108   : > { %v1154_v33 = vmul.f32 %v2458_v61, %v2462_v29  ;;  %v1152_v35 = vmul.f32 %v2458_v61, %v2471_v59  ;;  %v2509_v24 = vmul.f32 %v2350_v44, %v536_v46  ;;  %v775_v44 = vmul.f32 %v2375_v25, %v2500_v14 }
 0x10a   : > { %682 = vrot.lane.b32.xlu1 %v647_v49, %s2054_s10  ;;  %v649_v49 = vmul.f32 %v2287_v56, %v2500_v14 }
 0x10b   : > { %1306 = vrot.lane.b32.xlu0 %v1274_v52, %s2058_s14  ;;  %v2475_v34 = vpop.permute.xlu0 %1019  ;;  %v651_v52 = vmul.f32 %v2287_v56, %v2509_v24  ;;  %v901_v56 = vmul.f32 %v2402_v39, %v2500_v14 }
 0x10e   : > { %804 = vrot.lane.b32.xlu1 %v771_v1, %s2053_s9  ;;  %v902_v1 = vmul.f32 %v2402_v39, %v2462_v29 }
 0x10f   : > { %934 = vrot.lane.b32.xlu0 %v899_v4, %s2055_s11  ;;  %v2488_v38 = vpop.permute.xlu0 %1261  ;;  %v900_v4 = vmul.f32 %v2402_v39, %v2471_v59 }
 0x110   : > { %v1280_v58 = vmul.f32 %v2488_v38, %v2462_v29  ;;  %v1278_v48 = vmul.f32 %v2488_v38, %v2471_v59  ;;  %v1279_v3 = vmul.f32 %v2488_v38, %v2500_v14 }
 0x112   : > { %930 = vrot.lane.b32.xlu1 %v897_v8, %s2055_s11  ;;  %v2535_v8 = vpop.permute.xlu1 %1140 }
 0x113   : > { %1182 = vrot.lane.b32.xlu0 %v1149_v10, %s2057_s13  ;;  %v1027_v10 = vmul.f32 %v2432_v62, %v2500_v14  ;;  %v2539_v12 = vpop.permute.xlu0 %1145 }
 0x116   : > { %808 = vrot.lane.b32.xlu1 %v773_v18, %s2053_s9  ;;  %v903_v18 = vmul.f32 %v2402_v39, %v2509_v24  ;;  %v2549_v27 = vpop.permute.xlu1 %1382 }
 0x117   : > { %1060 = vrot.lane.b32.xlu0 %v1025_v21, %s2056_s12  ;;  %v777_v21 = vmul.f32 %v2375_v25, %v2509_v24  ;;  %v1155_v25 = vmul.f32 %v2458_v61, %v2509_v24 }
 0x11a   : > { %1056 = vrot.lane.b32.xlu1 %v1023_v20, %s2056_s12  ;;  %v2552_v20 = vpop.permute.xlu0 %1387  ;;  %v2561_v39 = vpop.permute.xlu1 %1266 }
 0x11b   : > { %1308 = vrot.lane.b32.xlu0 %v1275_v30, %s2058_s14  ;;  %v1029_v30 = vmul.f32 %v2432_v62, %v2509_v24  ;;  %v778_v62 = vmul.f32 %v2301_v0, %v2355_v50 }
 0x11e   : > { %1192 = vrot.lane.b32.xlu1 %v1154_v33, %s2057_s13  ;;  %v1153_v33 = vmul.f32 %v2458_v61, %v2500_v14 }
 0x11f   : > { %1186 = vrot.lane.b32.xlu0 %v1151_v19, %s2057_s13  ;;  %v2565_v19 = vpop.permute.xlu0 %1271 }
 0x122   : > { %1188 = vrot.lane.b32.xlu1 %v1152_v35, %s2057_s13  ;;  %v652_v35 = vmul.f32 %v2341_v36, %v2355_v50 }
 0x123   : > { %684 = vrot.lane.b32.xlu0 %v648_v11, %s2054_s10  ;;  %v2575_v11 = vpop.permute.xlu1 %1508  ;;  %v2578_v61 = vpop.permute.xlu0 %1513 }
 0x126   : > { %1318 = vrot.lane.b32.xlu1 %v1280_v58, %s2058_s14 }
 0x127   : > { %688 = vrot.lane.b32.xlu0 %v650_v23, %s2054_s10  ;;  %v2587_v58 = vpop.permute.xlu1 %1392  ;;  %v1032_v23 = vmul.f32 %v2377_v26, %v2358_v51  ;;  %v2591_v46 = vpop.permute.xlu0 %1397 }
 0x12a   : > { %1314 = vrot.lane.b32.xlu1 %v1278_v48, %s2058_s14  ;;  %v780_v48 = vmul.f32 %v2301_v0, %v2358_v51 }
 0x12b   : > { %814 = vrot.lane.b32.xlu0 %v776_v60, %s2053_s9  ;;  %v1158_v60 = vmul.f32 %v2535_v8, %v2358_v51 }
 0x12e   : > { %686 = vrot.lane.b32.xlu1 %v649_v49, %s2054_s10  ;;  %v904_v49 = vmul.f32 %v2318_v16, %v2355_v50 }
 0x12f   : > { %810 = vrot.lane.b32.xlu0 %v774_v40, %s2053_s9  ;;  %v2601_v40 = vpop.permute.xlu1 %1518 }
 0x132   : > { %690 = vrot.lane.b32.xlu1 %v651_v52, %s2054_s10  ;;  %v2604_v52 = vpop.permute.xlu0 %1523 }
 0x133   : > { %940 = vrot.lane.b32.xlu0 %v902_v1, %s2055_s11  ;;  %v653_v1 = vmul.f32 %v2341_v36, %v2364_v6 }
 0x136   : > { %812 = vrot.lane.b32.xlu1 %v775_v44, %s2053_s9  ;;  %v1030_v44 = vmul.f32 %v2377_v26, %v2355_v50 }
 0x137   : > { %936 = vrot.lane.b32.xlu0 %v900_v4, %s2055_s11  ;;  %v2613_v4 = vpop.permute.xlu1 %1638 }
 0x138   : > { %3252 = vst [vmem:[#allocation2_spill] sm:$0xff] %v2613_v4 }
 0x13a   : > { %938 = vrot.lane.b32.xlu1 %v901_v56, %s2055_s11  ;;  %v655_v56 = vmul.f32 %v2341_v36, %v2367_v7 }
 0x13b   : > { %1066 = vrot.lane.b32.xlu0 %v1028_v15, %s2056_s12  ;;  %v2617_v15 = vpop.permute.xlu0 %1633 }
 0x13c   : > { %3253 = vst [vmem:[#allocation3_spill] sm:$0xff] %v2617_v15 }
 0x13e   : > { %1064 = vrot.lane.b32.xlu1 %v1027_v10, %s2056_s12  ;;  %v905_v10 = vmul.f32 %v2318_v16, %v2364_v6 }
 0x13f   : > { %1062 = vrot.lane.b32.xlu0 %v1026_v17, %s2056_s12 }
 0x142   : > { %942 = vrot.lane.b32.xlu1 %v903_v18, %s2055_s11  ;;  %v779_v18 = vmul.f32 %v2301_v0, %v2364_v6 }
 0x143   : > { %816 = vrot.lane.b32.xlu0 %v777_v21, %s2053_s9 }
 0x146   : > { %1068 = vrot.lane.b32.xlu1 %v1029_v30, %s2056_s12  ;;  %v781_v30 = vmul.f32 %v2301_v0, %v2367_v7  ;;  %v908_v0 = vmul.f32 %v2445_v9, %v2382_v53 }
 0x147   : > { %1190 = vrot.lane.b32.xlu0 %v1153_v33, %s2057_s13  ;;  %v910_v33 = vmul.f32 %v2445_v9, %v2385_v31 }
 0x14a   : > { %1194 = vrot.lane.b32.xlu1 %v1155_v25, %s2057_s13 }
 0x14b   : > { %1316 = vrot.lane.b32.xlu0 %v1279_v3, %s2058_s14  ;;  %v1031_v3 = vmul.f32 %v2377_v26, %v2364_v6 }
 0x14e   : > { %818 = vrot.lane.b32.xlu1 %v778_v62, %s2053_s9 }
 0x14f   : > { %692 = vrot.lane.b32.xlu0 %v652_v35, %s2054_s10 }
 0x152   : > { %948 = vrot.lane.b32.xlu1 %v906_v37, %s2055_s11  ;;  %v907_v37 = vmul.f32 %v2318_v16, %v2367_v7  ;;  %v1034_v16 = vmul.f32 %v2475_v34, %v2382_v53 }
 0x153   : > { %696 = vrot.lane.b32.xlu0 %v654_v43, %s2054_s10 }
 0x156   : > { %1074 = vrot.lane.b32.xlu1 %v1032_v23, %s2056_s12  ;;  %v1036_v23 = vmul.f32 %v2475_v34, %v2385_v31 }
 0x157   : > { %822 = vrot.lane.b32.xlu0 %v780_v48, %s2053_s9 }
 0x15a   : > { %1200 = vrot.lane.b32.xlu1 %v1158_v60, %s2057_s13  ;;  %v1157_v60 = vmul.f32 %v2535_v8, %v2364_v6 }
 0x15b   : > { %944 = vrot.lane.b32.xlu0 %v904_v49, %s2055_s11 }
 0x15e   : > { %694 = vrot.lane.b32.xlu1 %v653_v1, %s2054_s10 }
 0x15f   : > { %1070 = vrot.lane.b32.xlu0 %v1030_v44, %s2056_s12  ;;  %v656_v44 = vmul.f32 %v2289_v57, %v2382_v53 }
 0x162   : > { %698 = vrot.lane.b32.xlu1 %v655_v56, %s2054_s10 }
 0x163   : > { %946 = vrot.lane.b32.xlu0 %v905_v10, %s2055_s11  ;;  %v1162_v10 = vmul.f32 %v2539_v12, %v2385_v31 }
 0x164   : > { %v2623_v17 = vpop.permute.xlu1 %802  ;;  %v2627_v21 = vpop.permute.xlu0 %676 }
 0x165   : > { %3254 = vst [vmem:[#allocation4_spill] sm:$0xff] %v2623_v17  ;;  %3255 = vst [vmem:[#allocation5_spill] sm:$0xff] %v2627_v21 }
 0x166   : > { %820 = vrot.lane.b32.xlu1 %v779_v18, %s2053_s9 }
 0x167   : > { %824 = vrot.lane.b32.xlu0 %v781_v30, %s2053_s9  ;;  %v658_v30 = vmul.f32 %v2289_v57, %v2385_v31 }
 0x168   : > { %v2633_v36 = vpop.permute.xlu1 %928 }
 0x169   : > { %3256 = vst [vmem:[#allocation6_spill] sm:$0xff] %v2633_v36  ;;  %v2637_v25 = vpop.permute.xlu0 %680  ;;  %v1405_v36 = vmul.f32 %v2552_v20, %v2500_v14 }
 0x16a   : > { %956 = vrot.lane.b32.xlu1 %v910_v33, %s2055_s11 }
 0x16b   : > { %1072 = vrot.lane.b32.xlu0 %v1031_v3, %s2056_s12  ;;  %v657_v3 = vmul.f32 %v2289_v57, %v2389_v13 }
 0x16c   : > { %v2643_v62 = vpop.permute.xlu1 %1054 }
 0x16d   : > { %3257 = vst [vmem:[#allocation7_spill] sm:$0xff] %v2643_v62  ;;  %v2647_v35 = vpop.permute.xlu0 %806  ;;  %v1401_v62 = vmul.f32 %v2549_v27, %v2408_v42 }
 0x16e   : > { %952 = vrot.lane.b32.xlu1 %v908_v0, %s2055_s11 }
 0x16f   : > { %950 = vrot.lane.b32.xlu0 %v907_v37, %s2055_s11  ;;  %v784_v37 = vmul.f32 %v2421_v47, %v2385_v31 }
 0x170   : > { %v2653_v43 = vpop.permute.xlu1 %1184 }
 0x171   : > { %3258 = vst [vmem:[#allocation8_spill] sm:$0xff] %v2653_v43  ;;  %v2657_v48 = vpop.permute.xlu0 %932 }
 0x172   : > { %3259 = vst [vmem:[#allocation9_spill] sm:$0xff] %v2657_v48  ;;  %1082 = vrot.lane.b32.xlu1 %v1036_v23, %s2056_s12 }
 0x173   : > { %1198 = vrot.lane.b32.xlu0 %v1157_v60, %s2057_s13  ;;  %v783_v60 = vmul.f32 %v2421_v47, %v2389_v13 }
 0x174   : > { %v2663_v49 = vpop.permute.xlu1 %1310 }
 0x175   : > { %3260 = vst [vmem:[#allocation10_spill] sm:$0xff] %v2663_v49  ;;  %v2667_v1 = vpop.permute.xlu0 %1058 }
 0x176   : > { %3261 = vst [vmem:[#allocation11_spill] sm:$0xff] %v2667_v1  ;;  %1078 = vrot.lane.b32.xlu1 %v1034_v16, %s2056_s12 }
 0x177   : > { %700 = vrot.lane.b32.xlu0 %v656_v44, %s2054_s10  ;;  %v782_v44 = vmul.f32 %v2421_v47, %v2382_v53 }
 0x178   : > { %v2673_v56 = vpop.permute.xlu1 %678 }
 0x179   : > { %v2677_v18 = vpop.permute.xlu0 %1180 }
 0x17a   : > { %3262 = vst [vmem:[#allocation12_spill] sm:$0xff] %v2677_v18  ;;  %1208 = vrot.lane.b32.xlu1 %v1162_v10, %s2057_s13  ;;  %v1161_v18 = vmul.f32 %v2539_v12, %v2389_v13 }
 0x17b   : > { %704 = vrot.lane.b32.xlu0 %v658_v30, %s2054_s10  ;;  %v659_v30 = vmul.f32 %v2289_v57, %v2392_v32 }
 0x17c   : > { %v2683_v33 = vpop.permute.xlu1 %682 }
 0x17d   : > { %v2687_v0 = vpop.permute.xlu0 %1306 }
 0x17e   : > { %3263 = vst [vmem:[#allocation13_spill] sm:$0xff] %v2687_v0  ;;  %702 = vrot.lane.b32.xlu1 %v657_v3, %s2054_s10  ;;  %v1035_v0 = vmul.f32 %v2475_v34, %v2389_v13 }
 0x17f   : > { %830 = vrot.lane.b32.xlu0 %v784_v37, %s2053_s9  ;;  %v909_v37 = vmul.f32 %v2445_v9, %v2389_v13 }
 0x180   : > { %v2693_v23 = vpop.permute.xlu1 %804 }
 0x181   : > { %3264 = vst [vmem:[#allocation14_spill] sm:$0xff] %v2693_v23  ;;  %v2697_v16 = vpop.permute.xlu0 %934 }
 0x182   : > { %3265 = vst [vmem:[#allocation15_spill] sm:$0xff] %v2697_v16  ;;  %828 = vrot.lane.b32.xlu1 %v783_v60, %s2053_s9  ;;  %v785_v60 = vmul.f32 %v2421_v47, %v2392_v32 }
 0x183   : > { %826 = vrot.lane.b32.xlu0 %v782_v44, %s2053_s9 }
 0x184   : > { %v2703_v10 = vpop.permute.xlu1 %930 }
 0x185   : > { %3266 = vst [vmem:[#allocation16_spill] sm:$0xff] %v2703_v10  ;;  %v2707_v3 = vpop.permute.xlu0 %1182  ;;  %v1288_v10 = vmul.f32 %v2565_v19, %v2385_v31 }
 0x186   : > { %3267 = vst [vmem:[#allocation17_spill] sm:$0xff] %v2707_v3  ;;  %706 = vrot.lane.b32.xlu1 %v659_v30, %s2054_s10  ;;  %v911_v30 = vmul.f32 %v2445_v9, %v2392_v32 }
 0x187   : > { %954 = vrot.lane.b32.xlu0 %v909_v37, %s2055_s11 }
 0x188   : > { %v2713_v5 = vpop.permute.xlu1 %808 }
 0x189   : > { %v2717_v44 = vpop.permute.xlu0 %1060 }
 0x18a   : > { %3268 = vst [vmem:[#allocation18_spill] sm:$0xff] %v2717_v44  ;;  %832 = vrot.lane.b32.xlu1 %v785_v60, %s2053_s9  ;;  %v1402_v60 = vmul.f32 %v2549_v27, %v2338_v28  ;;  %s2018_s9 = smul.u32 48, %s3294_s28 }
 0x18b   : > { %1080 = vrot.lane.b32.xlu0 %v1035_v0, %s2056_s12 }
 0x18c   : > { %v2723_v57 = vpop.permute.xlu1 %1056 }
 0x18d   : > { %3269 = vst [vmem:[#allocation19_spill] sm:$0xff] %v2723_v57  ;;  %v2727_v37 = vpop.permute.xlu0 %1308  ;;  %v1281_v57 = vmul.f32 %v2488_v38, %v2509_v24  ;;  %v611_v38 = vmul.f32 %v2283_v54, %v2500_v14 }
 0x18e   : > { %3270 = vst [vmem:[#allocation20_spill] sm:$0xff] %v2727_v37  ;;  %958 = vrot.lane.b32.xlu1 %v911_v30, %s2055_s11 }
 0x18f   : > { %1206 = vrot.lane.b32.xlu0 %v1161_v18, %s2057_s13  ;;  %v1406_v18 = vmul.f32 %v2552_v20, %v2462_v29 }
 0x190   : > { %v2733_v47 = vpop.permute.xlu1 %1192 }
 0x191   : > { %v2737_v0 = vpop.permute.xlu0 %1186 }
 0x192   : > { %3271 = vst [vmem:[#allocation21_spill] sm:$0xff] %v2737_v0  ;;  %1436 = vrot.lane.b32.xlu1 %v1402_v60, %s2059_s15  ;;  %v1160_v60 = vmul.f32 %v2539_v12, %v2382_v53 }
 0x193   : > { %1434 = vrot.lane.b32.xlu0 %v1401_v62, %s2059_s15  ;;  %v1156_v62 = vmul.f32 %v2535_v8, %v2355_v50 }
 0x194   : > { %v2743_v9 = vpop.permute.xlu1 %1188 }
 0x195   : > { %v685_v30 = vpop.permute.xlu0 %684 }
 0x196   : > { %1444 = vrot.lane.b32.xlu1 %v1406_v18, %s2059_s15  ;;  %v1404_v18 = vmul.f32 %v2552_v20, %v2471_v59 }
 0x197   : > { %1442 = vrot.lane.b32.xlu0 %v1405_v36, %s2059_s15  ;;  %v1400_v36 = vmul.f32 %v2549_v27, %v2327_v22 }
 0x198   : > { %v2751_v17 = vpop.permute.xlu1 %1318 }
 0x199   : > { %v689_v21 = vpop.permute.xlu0 %688 }
 0x19a   : > { %1204 = vrot.lane.b32.xlu1 %v1160_v60, %s2057_s13  ;;  %v1037_v60 = vmul.f32 %v2475_v34, %v2392_v32 }
 0x19b   : > { %1196 = vrot.lane.b32.xlu0 %v1156_v62, %s2057_s13  ;;  %v1033_v62 = vmul.f32 %v2377_v26, %v2367_v7  ;;  %v1284_v26 = vmul.f32 %v2561_v39, %v2358_v51 }
 0x19c   : > { %v2759_v4 = vpop.permute.xlu1 %1314 }
 0x19d   : > { %v2763_v15 = vpop.permute.xlu0 %814 }
 0x19e   : > { %1440 = vrot.lane.b32.xlu1 %v1404_v18, %s2059_s15  ;;  %v1277_v18 = vmul.f32 %v2404_v41, %v2417_v45 }
 0x19f   : > { %1432 = vrot.lane.b32.xlu0 %v1400_v36, %s2059_s15 }
 0x1a0   : > { %v687_v37 = vpop.permute.xlu1 %686 }
 0x1a1   : > { %v811_v3 = vpop.permute.xlu0 %810  ;;  %v713_v36 = vsel %vm708_vm1, %v687_v37, %v689_v21  ;;  %v712_v41 = vsel %vm708_vm1, %v685_v30, %v687_v37 }
 0x1a2   : > { %1084 = vrot.lane.b32.xlu1 %v1037_v60, %s2056_s12  ;;  %v737_v0 = vadd.f32 %v713_v36, %v611_v38  ;;  %v1528_v36 = vmul.f32 %v2575_v11, %v2338_v28 }
 0x1a3   : > { %1076 = vrot.lane.b32.xlu0 %v1033_v62, %s2056_s12  ;;  %v1283_v62 = vmul.f32 %v2561_v39, %v2364_v6 }
 0x1a4   : > { %v691_v49 = vpop.permute.xlu1 %690 }
 0x1a5   : > { %v941_v43 = vpop.permute.xlu0 %940 }
 0x1a6   : > { %1320 = vrot.lane.b32.xlu1 %v1281_v57, %s2058_s14  ;;  %v610_v57 = vmul.f32 %v2283_v54, %v2471_v59 }
 0x1a7   : > { %1312 = vrot.lane.b32.xlu0 %v1277_v18, %s2058_s14 }
 0x1a8   : > { %v813_v34 = vpop.permute.xlu1 %812  ;;  %v736_v23 = vadd.f32 %v712_v41, %v610_v57 }
 0x1a9   : > { %v937_v60 = vpop.permute.xlu0 %936  ;;  %v839_v18 = vsel %vm834_vm2, %v813_v34, %v2763_v15  ;;  %v838_v1 = vsel %vm834_vm2, %v811_v3, %v813_v34 }
 0x1aa   : > { %1326 = vrot.lane.b32.xlu1 %v1284_v26, %s2058_s14  ;;  %v1287_v26 = vmul.f32 %v2565_v19, %v2389_v13  ;;  %v863_v48 = vadd.f32 %v839_v18, %v737_v0  ;;  %v1527_v0 = vmul.f32 %v2575_v11, %v2408_v42 }
 0x1ab   : > { %1324 = vrot.lane.b32.xlu0 %v1283_v62, %s2058_s14  ;;  %v862_v62 = vadd.f32 %v838_v1, %v736_v23 }
 0x1ac   : > { %v939_v44 = vpop.permute.xlu1 %938 }
 0x1ad   : > { %v965_v37 = vsel %vm960_vm3, %v939_v44, %v941_v43  ;;  %v1067_v30 = vpop.permute.xlu0 %1066  ;;  %v964_v16 = vsel %vm960_vm3, %v937_v60, %v939_v44  ;;  %v714_v44 = vsel %vm708_vm1, %v689_v21, %v691_v49  ;;  %v1531_v21 = vmul.f32 %v2578_v61, %v2500_v14 }
 0x1ae   : > { %1334 = vrot.lane.b32.xlu1 %v1288_v10, %s2058_s14  ;;  %v989_v3 = vadd.f32 %v965_v37, %v863_v48  ;;  %v988_v38 = vadd.f32 %v964_v16, %v862_v62  ;;  %v612_v48 = vmul.f32 %v2283_v54, %v2462_v29  ;;  %v1532_v10 = vmul.f32 %v2578_v61, %v2462_v29  ;;  %v1630_v54 = vld [vmem:[%s3236_s5 + $0x18] sm:$0xff] }
 0x1af   : > { %1332 = vrot.lane.b32.xlu0 %v1287_v26, %s2058_s14 }
 0x1b0   : > { %v1065_v34 = vpop.permute.xlu1 %1064  ;;  %v738_v18 = vadd.f32 %v714_v44, %v612_v48  ;;  %v1286_v44 = vmul.f32 %v2565_v19, %v2382_v53 }
 0x1b1   : > { %v1091_v41 = vsel %vm1086_vm4, %v1065_v34, %v1067_v30  ;;  %v1063_v57 = vpop.permute.xlu0 %1062 }
 0x1b2   : > { %v1115_v60 = vadd.f32 %v1091_v41, %v989_v3  ;;  %v1090_v1 = vsel %vm1086_vm4, %v1063_v57, %v1065_v34  ;;  %1562 = vrot.lane.b32.xlu1 %v1528_v36, %s2060_s16  ;;  %v1629_v3 = vld [vmem:[%s3236_s5 + $0x10] sm:$0xff] }
 0x1b3   : > { %v1114_v23 = vadd.f32 %v1090_v1, %v988_v38  ;;  %1560 = vrot.lane.b32.xlu0 %v1527_v0, %s2060_s16 }
 0x1b4   : > { %v943_v16 = vpop.permute.xlu1 %942 }
 0x1b5   : > { %v817_v37 = vpop.permute.xlu0 %816  ;;  %v966_v62 = vsel %vm960_vm3, %v941_v43, %v943_v16 }
 0x1b6   : > { %v840_v49 = vsel %vm834_vm2, %v2763_v15, %v817_v37  ;;  %1570 = vrot.lane.b32.xlu1 %v1532_v10, %s2060_s16 }
 0x1b7   : > { %v864_v26 = vadd.f32 %v840_v49, %v738_v18  ;;  %1568 = vrot.lane.b32.xlu0 %v1531_v21, %s2060_s16  ;;  %v1530_v18 = vmul.f32 %v2578_v61, %v2471_v59  ;;  %v1526_v21 = vmul.f32 %v2575_v11, %v2327_v22  ;;  %v1163_v49 = vmul.f32 %v2539_v12, %v2392_v32 }
 0x1b8   : > { %v1069_v29 = vpop.permute.xlu1 %1068 }
 0x1b9   : > { %v990_v14 = vadd.f32 %v966_v62, %v864_v26  ;;  %v1092_v15 = vsel %vm1086_vm4, %v1067_v30, %v1069_v29  ;;  %v1191_v34 = vpop.permute.xlu0 %1190  ;;  %v1407_v62 = vmul.f32 %v2552_v20, %v2509_v24  ;;  %v614_v20 = vmul.f32 %v2303_v2, %v2364_v6 }
 0x1ba   : > { %v1216_v36 = vsel %vm1212_vm5, %v2743_v9, %v1191_v34  ;;  %v1217_v38 = vsel %vm1212_vm5, %v1191_v34, %v2733_v47  ;;  %1648 = vperm.xlu1 %2038, %v1630_v54   ;;  %v1282_v9 = vmul.f32 %v2561_v39, %v2355_v50  ;;  %v1159_v54 = vmul.f32 %v2535_v8, %v2367_v7 }
 0x1bb   : > { %v1116_v41 = vadd.f32 %v1092_v15, %v990_v14  ;;  %v1240_v57 = vadd.f32 %v1216_v36, %v1114_v23  ;;  %v1241_v43 = vadd.f32 %v1217_v38, %v1115_v60  ;;  %1643 = vperm.xlu0 %2037, %v1629_v3   ;;  %v1403_v3 = vmul.f32 %v2549_v27, %v2417_v45 }
 0x1bc   : > { %v1195_v0 = vpop.permute.xlu1 %1194  ;;  %v1410_v8 = vmul.f32 %v2587_v58, %v2358_v51  ;;  %v1409_v15 = vmul.f32 %v2587_v58, %v2364_v6  ;;  %v613_v27 = vmul.f32 %v2303_v2, %v2355_v50  ;;  %v1414_v36 = vmul.f32 %v2591_v46, %v2385_v31 }
 0x1bd   : > { %v1218_v30 = vsel %vm1212_vm5, %v2733_v47, %v1195_v0  ;;  %v1317_v1 = vpop.permute.xlu0 %1316 }
 0x1be   : > { %v2841_v48 = vadd.f32 %v1218_v30, %v1116_v41  ;;  %v1342_v16 = vsel %vm1338_vm6, %v2759_v4, %v1317_v1  ;;  %v1343_v60 = vsel %vm1338_vm6, %v1317_v1, %v2751_v17  ;;  %1330 = vrot.lane.b32.xlu1 %v1286_v44, %s2058_s14  ;;  %v615_v30 = vmul.f32 %v2303_v2, %v2358_v51 }
 0x1bf   : > { %v2848_v23 = vadd.f32 %v1342_v16, %v1240_v57  ;;  %v2850_v10 = vadd.f32 %v1343_v60, %v1241_v43  ;;  %1322 = vrot.lane.b32.xlu0 %v1282_v9, %s2058_s14  ;;  %v1413_v43 = vmul.f32 %v2591_v46, %v2389_v13  ;;  %v1412_v9 = vmul.f32 %v2591_v46, %v2382_v53 }
 0x1c0   : > { %v819_v47 = vpop.permute.xlu1 %818 }
 0x1c1   : > { %v693_v37 = vpop.permute.xlu0 %692 }
 0x1c2   : > { %1566 = vrot.lane.b32.xlu1 %v1530_v18, %s2060_s16  ;;  %v1408_v18 = vmul.f32 %v2587_v58, %v2355_v50 }
 0x1c3   : > { %1558 = vrot.lane.b32.xlu0 %v1526_v21, %s2060_s16 }
 0x1c4   : > { %v2859_v4 = vpop.permute.xlu1 %948 }
 0x1c5   : > { %v697_v26 = vpop.permute.xlu0 %696 }
 0x1c6   : > { %1210 = vrot.lane.b32.xlu1 %v1163_v49, %s2057_s13 }
 0x1c7   : > { %1202 = vrot.lane.b32.xlu0 %v1159_v54, %s2057_s13  ;;  %v1289_v54 = vmul.f32 %v2565_v19, %v2392_v32 }
 0x1c8   : > { %v2867_v59 = vpop.permute.xlu1 %1074 }
 0x1c9   : > { %v823_v29 = vpop.permute.xlu0 %822 }
 0x1ca   : > { %1446 = vrot.lane.b32.xlu1 %v1407_v62, %s2059_s15 }
 0x1cb   : > { %1438 = vrot.lane.b32.xlu0 %v1403_v3, %s2059_s15 }
 0x1cc   : > { %v2875_v12 = vpop.permute.xlu1 %1200 }
 0x1cd   : > { %v945_v14 = vpop.permute.xlu0 %944 }
 0x1ce   : > { %1452 = vrot.lane.b32.xlu1 %v1410_v8, %s2059_s15  ;;  %v1285_v8 = vmul.f32 %v2561_v39, %v2367_v7  ;;  %v1529_v39 = vmul.f32 %v2575_v11, %v2417_v45  ;;  %v1535_v45 = vmul.f32 %v2601_v40, %v2364_v6 }
 0x1cf   : > { %1450 = vrot.lane.b32.xlu0 %v1409_v15, %s2059_s15 }
 0x1d0   : > { %v695_v34 = vpop.permute.xlu1 %694 }
 0x1d1   : > { %v715_v38 = vsel %vm708_vm1, %v693_v37, %v695_v34  ;;  %v716_v41 = vsel %vm708_vm1, %v695_v34, %v697_v26  ;;  %v1071_v57 = vpop.permute.xlu0 %1070 }
 0x1d2   : > { %v739_v0 = vadd.f32 %v715_v38, %v613_v27  ;;  %v740_v44 = vadd.f32 %v716_v41, %v614_v20  ;;  %1460 = vrot.lane.b32.xlu1 %v1414_v36, %s2059_s15 }
 0x1d3   : > { %1458 = vrot.lane.b32.xlu0 %v1413_v43, %s2059_s15 }
 0x1d4   : > { %v699_v1 = vpop.permute.xlu1 %698 }
 0x1d5   : > { %v717_v16 = vsel %vm708_vm1, %v697_v26, %v699_v1  ;;  %v947_v60 = vpop.permute.xlu0 %946  ;;  %v1540_v1 = vmul.f32 %v2604_v52, %v2385_v31 }
 0x1d6   : > { %v741_v37 = vadd.f32 %v717_v16, %v615_v30  ;;  %v967_v21 = vsel %vm960_vm3, %v945_v14, %v947_v60  ;;  %v968_v49 = vsel %vm960_vm3, %v947_v60, %v2859_v4  ;;  %1456 = vrot.lane.b32.xlu1 %v1412_v9, %s2059_s15  ;;  %v1538_v60 = vmul.f32 %v2604_v52, %v2382_v53 }
 0x1d7   : > { %1448 = vrot.lane.b32.xlu0 %v1408_v18, %s2059_s15 }
 0x1d8   : > { %v821_v2 = vpop.permute.xlu1 %820 }
 0x1d9   : > { %v841_v26 = vsel %vm834_vm2, %v819_v47, %v821_v2  ;;  %v842_v62 = vsel %vm834_vm2, %v821_v2, %v823_v29  ;;  %v825_v3 = vpop.permute.xlu0 %824  ;;  %v1533_v47 = vmul.f32 %v2578_v61, %v2509_v24  ;;  %v1536_v24 = vmul.f32 %v2601_v40, %v2358_v51 }
 0x1da   : > { %v865_v14 = vadd.f32 %v841_v26, %v739_v0  ;;  %v866_v15 = vadd.f32 %v842_v62, %v740_v44  ;;  %v843_v27 = vsel %vm834_vm2, %v823_v29, %v825_v3  ;;  %1336 = vrot.lane.b32.xlu1 %v1289_v54, %s2058_s14  ;;  %v1539_v51 = vmul.f32 %v2604_v52, %v2389_v13 }
 0x1db   : > { %v867_v20 = vadd.f32 %v843_v27, %v741_v37  ;;  %1328 = vrot.lane.b32.xlu0 %v1285_v8, %s2058_s14  ;;  %v1534_v37 = vmul.f32 %v2601_v40, %v2355_v50  ;;  %v1411_v54 = vmul.f32 %v2587_v58, %v2367_v7  ;;  %v616_v50 = vmul.f32 %v2285_v55, %v2382_v53 }
 0x1dc   : > { %v2916_v34 = vpop.permute.xlu1 %956  ;;  %v991_v19 = vadd.f32 %v967_v21, %v865_v14  ;;  %v992_v36 = vadd.f32 %v968_v49, %v866_v15  ;;  %v1415_v49 = vmul.f32 %v2591_v46, %v2392_v32  ;;  %v617_v26 = vmul.f32 %v2285_v55, %v2389_v13 }
 0x1dd   : > { %v1073_v38 = vpop.permute.xlu0 %1072  ;;  %v1541_v3 = vmul.f32 %v2604_v52, %v2392_v32  ;;  %v1537_v14 = vmul.f32 %v2601_v40, %v2367_v7  ;;  %v2040_v7 = vld [vmem:[%s2134_s18 + $0x8] sm:$0xff]  ;;  %v618_v40 = vmul.f32 %v2285_v55, %v2385_v31 }
 0x1de   : > { %v1093_v41 = vsel %vm1086_vm4, %v1071_v57, %v1073_v38  ;;  %v1094_v29 = vsel %vm1086_vm4, %v1073_v38, %v2867_v59  ;;  %1572 = vrot.lane.b32.xlu1 %v1533_v47, %s2060_s16  ;;  %v1696_v55 = vld [vmem:[%s3238_s7 + $0x8] sm:$0xff] }
 0x1df   : > { %v2926_v43 = vadd.f32 %v1093_v41, %v991_v19  ;;  %v1118_v0 = vadd.f32 %v1094_v29, %v992_v36  ;;  %1564 = vrot.lane.b32.xlu0 %v1529_v39, %s2060_s16  ;;  %v2039_v19 = vld [vmem:[%s2134_s18 + $0x10] sm:$0xff] }
 0x1e0   : > { %v953_v44 = vpop.permute.xlu1 %952 }
 0x1e1   : > { %v951_v61 = vpop.permute.xlu0 %950 }
 0x1e2   : > { %v969_v11 = vsel %vm960_vm3, %v2859_v4, %v951_v61  ;;  %1578 = vrot.lane.b32.xlu1 %v1536_v24, %s2060_s16  ;;  %v2041_v24 = vld [vmem:[%s2134_s18 + $0x18] sm:$0xff] }
 0x1e3   : > { %v2936_v57 = vadd.f32 %v969_v11, %v867_v20  ;;  %1576 = vrot.lane.b32.xlu0 %v1535_v45, %s2060_s16  ;;  %v2042_v11 = vld [vmem:[%s2134_s18] sm:$0xff] }
 0x1e4   : > { %v2939_v30 = vpop.permute.xlu1 %1082 }
 0x1e5   : > { %v2943_v9 = vpop.permute.xlu0 %1198 }
 0x1e6   : > { %v1220_v6 = vsel %vm1212_vm5, %v2943_v9, %v2875_v12  ;;  %1586 = vrot.lane.b32.xlu1 %v1540_v1, %s2060_s16  ;;  %v3005_v1 = vld [vmem:[%s3237_s6] sm:$0xff] }
 0x1e7   : > { %v2951_v4 = vadd.f32 %v1220_v6, %v1118_v0  ;;  %1584 = vrot.lane.b32.xlu0 %v1539_v51, %s2060_s16  ;;  %1999 = vmatprep.mubr.msk.f32.mxu1 %vm1707_vm7, %v3005_v1 }
 0x1e8   : > { %v1079_v16 = vpop.permute.xlu1 %1078 }
 0x1e9   : > { %v701_v18 = vpop.permute.xlu0 %700 }
 0x1ea   : > { %1582 = vrot.lane.b32.xlu1 %v1538_v60, %s2060_s16 }
 0x1eb   : > { %1574 = vrot.lane.b32.xlu0 %v1534_v37, %s2060_s16 }
 0x1ec   : > { %v2960_v21 = vpop.permute.xlu1 %1208 }
 0x1ed   : > { %v705_v2 = vpop.permute.xlu0 %704 }
 0x1ee   : > { %1462 = vrot.lane.b32.xlu1 %v1415_v49, %s2059_s15 }
 0x1ef   : > { %1454 = vrot.lane.b32.xlu0 %v1411_v54, %s2059_s15 }
 0x1f0   : > { %v703_v62 = vpop.permute.xlu1 %702 }
 0x1f1   : > { %v718_v46 = vsel %vm708_vm1, %v701_v18, %v703_v62  ;;  %v719_v58 = vsel %vm708_vm1, %v703_v62, %v705_v2  ;;  %v831_v8 = vpop.permute.xlu0 %830 }
 0x1f2   : > { %v742_v15 = vadd.f32 %v718_v46, %v616_v50  ;;  %v743_v27 = vadd.f32 %v719_v58, %v617_v26  ;;  %1588 = vrot.lane.b32.xlu1 %v1541_v3, %s2060_s16 }
 0x1f3   : > { %1580 = vrot.lane.b32.xlu0 %v1537_v14, %s2060_s16 }
 0x1f4   : > { %v829_v53 = vpop.permute.xlu1 %828 }
 0x1f5   : > { %v845_v13 = vsel %vm834_vm2, %v829_v53, %v831_v8  ;;  %v827_v32 = vpop.permute.xlu0 %826 }
 0x1f6   : > { %v869_v52 = vadd.f32 %v845_v13, %v743_v27  ;;  %v844_v20 = vsel %vm834_vm2, %v827_v32, %v829_v53  ;;  %1683 = vrot.lane.b32.xlu1 %v2039_v19, %s2056_s12  ;;  %v837_v27 = vsel %vm834_vm2, %v2647_v35, %v2713_v5  ;;  %v710_v5 = vsel %vm708_vm1, %v2673_v56, %v2637_v25 }
 0x1f7   : > { %v868_v36 = vadd.f32 %v844_v20, %v742_v15  ;;  %1681 = vrot.lane.b32.xlu0 %v2040_v7, %s2056_s12  ;;  %v711_v15 = vsel %vm708_vm1, %v2637_v25, %v2683_v33 }
 0x1f8   : > { %v707_v47 = vpop.permute.xlu1 %706 }
 0x1f9   : > { %v720_v38 = vsel %vm708_vm1, %v705_v2, %v707_v47  ;;  %v955_v39 = vpop.permute.xlu0 %954  ;;  %v3273_v47 = vld [vmem:[#allocation9_spill] sm:$0xff] }
 0x1fa   : > { %v744_v41 = vadd.f32 %v720_v38, %v618_v40  ;;  %v970_v29 = vsel %vm960_vm3, %v953_v44, %v955_v39  ;;  %v971_v0 = vsel %vm960_vm3, %v955_v39, %v2916_v34  ;;  %1685 = vrot.lane.b32.xlu1 %v2041_v24, %s2056_s12  ;;  %v1695_v44 = vld [vmem:[%s3238_s7] sm:$0xff]  ;;  %v3272_v40 = vld [vmem:[#allocation15_spill] sm:$0xff]  ;;  %v608_v39 = vmul.f32 %v2299_v63, %v2408_v42  ;;  %v3275_v24 = vld [vmem:[#allocation16_spill] sm:$0xff] }
 0x1fb   : > { %v994_v61 = vadd.f32 %v970_v29, %v868_v36  ;;  %v995_v45 = vadd.f32 %v971_v0, %v869_v52  ;;  %1679 = vrot.lane.b32.xlu0 %v2042_v11, %s2056_s12  ;;  %v963_v38 = vsel %vm960_vm3, %v3273_v47, %v3272_v40  ;;  %v3276_v11 = vld [vmem:[#allocation18_spill] sm:$0xff]  ;;  %v3278_v42 = vld [vmem:[#allocation21_spill] sm:$0xff]  ;;  %s305_s12 = scalar_lea.vmem %s3239_s8, %s2018_s9 }
 0x1fc   : > { %v833_v31 = vpop.permute.xlu1 %832  ;;  %v734_v0 = vadd.f32 %v710_v5, %v608_v39  ;;  %v3283_v5 = vld [vmem:[#allocation20_spill] sm:$0xff] }
 0x1fd   : > { %v846_v51 = vsel %vm834_vm2, %v831_v8, %v833_v31  ;;  %v1081_v6 = vpop.permute.xlu0 %1080 }
 0x1fe   : > { %v870_v60 = vadd.f32 %v846_v51, %v744_v41  ;;  %v1096_v18 = vsel %vm1086_vm4, %v1079_v16, %v1081_v6  ;;  %v1097_v37 = vsel %vm1086_vm4, %v1081_v6, %v2939_v30  ;;  %1704 = vperm.xlu1 %2038, %v1696_v55   ;;  %v3274_v41 = vld [vmem:[#allocation14_spill] sm:$0xff]  ;;  %v3277_v55 = vld [vmem:[#allocation11_spill] sm:$0xff] }
 0x1ff   : > { %v1120_v49 = vadd.f32 %v1096_v18, %v994_v61  ;;  %v1121_v2 = vadd.f32 %v1097_v37, %v995_v45  ;;  %1699 = vperm.xlu0 %2037, %v1695_v44   ;;  %v962_v61 = vsel %vm960_vm3, %v3275_v24, %v3273_v47  ;;  %v1089_v31 = vsel %vm1086_vm4, %v3277_v55, %v3276_v11  ;;  %v3279_v44 = vld [vmem:[#allocation8_spill] sm:$0xff] }
 0x200   : > { %v959_v54 = vpop.permute.xlu1 %958  ;;  %v1215_v51 = vsel %vm1212_vm5, %v3279_v44, %v3278_v42 }
 0x201   : > { %v972_v50 = vsel %vm960_vm3, %v2916_v34, %v959_v54  ;;  %v1207_v26 = vpop.permute.xlu0 %1206  ;;  %v609_v34 = vmul.f32 %v2299_v63, %v2338_v28 }
 0x202   : > { %v996_v62 = vadd.f32 %v972_v50, %v870_v60  ;;  %v1223_v3 = vsel %vm1212_vm5, %v1207_v26, %v2960_v21 }
 0x203   : > { %v1247_v46 = vadd.f32 %v1223_v3, %v1121_v2  ;;  %v735_v13 = vadd.f32 %v711_v15, %v609_v34 }
 0x204   : > { %v3017_v58 = vpop.permute.xlu1 %1436 }
 0x205   : > { %v3019_v16 = vpop.permute.xlu0 %1434  ;;  %v861_v36 = vadd.f32 %v837_v27, %v735_v13  ;;  %v3282_v13 = vld [vmem:[#allocation17_spill] sm:$0xff] }
 0x206   : > { %v1466_v47 = vsel %vm1464_vm8, %v3019_v16, %v3017_v58 }
 0x208   : > { %v3021_v8 = vpop.permute.xlu1 %1444 }
 0x209   : > { %v3023_v14 = vpop.permute.xlu0 %1442 }
 0x20c   : > { %v1205_v53 = vpop.permute.xlu1 %1204 }
 0x20d   : > { %v1222_v32 = vsel %vm1212_vm5, %v1205_v53, %v1207_v26  ;;  %v1197_v52 = vpop.permute.xlu0 %1196 }
 0x20e   : > { %v3034_v20 = vadd.f32 %v1222_v32, %v1120_v49  ;;  %v1219_v19 = vsel %vm1212_vm5, %v1197_v52, %v2943_v9  ;;  %v987_v9 = vadd.f32 %v963_v38, %v861_v36  ;;  %v1214_v32 = vsel %vm1212_vm5, %v3282_v13, %v3279_v44 }
 0x20f   : > { %v3039_v33 = vadd.f32 %v1219_v19, %v2926_v43  ;;  %v836_v43 = vsel %vm834_vm2, %v3274_v41, %v2647_v35 }
 0x210   : > { %v3041_v7 = vpop.permute.xlu1 %1440  ;;  %v860_v60 = vadd.f32 %v836_v43, %v734_v0  ;;  %v1113_v18 = vadd.f32 %v1089_v31, %v987_v9  ;;  %v1469_v0 = vsel %vm1464_vm8, %v3023_v14, %v3021_v8  ;;  %v3284_v31 = vld [vmem:[#allocation3_spill] sm:$0xff] }
 0x211   : > { %v3043_v28 = vpop.permute.xlu0 %1432  ;;  %v1493_v11 = vadd.f32 %v1469_v0, %v2850_v10  ;;  %v3287_v10 = vld [vmem:[#allocation4_spill] sm:$0xff] }
 0x212   : > { %v986_v54 = vadd.f32 %v962_v61, %v860_v60  ;;  %v1239_v50 = vadd.f32 %v1215_v51, %v1113_v18  ;;  %v3285_v51 = vld [vmem:[#allocation2_spill] sm:$0xff]  ;;  %v3286_v60 = vld [vmem:[#allocation5_spill] sm:$0xff] }
 0x213   : > { %v709_v18 = vsel %vm708_vm1, %v3286_v60, %v2673_v56 }
 0x214   : > { %v1085_v29 = vpop.permute.xlu1 %1084 }
 0x215   : > { %v1098_v25 = vsel %vm1086_vm4, %v2939_v30, %v1085_v29  ;;  %v1077_v45 = vpop.permute.xlu0 %1076  ;;  %v3280_v30 = vld [vmem:[#allocation19_spill] sm:$0xff] }
 0x216   : > { %v3067_v6 = vadd.f32 %v1098_v25, %v996_v62  ;;  %v1095_v35 = vsel %vm1086_vm4, %v2867_v59, %v1077_v45  ;;  %v1088_v49 = vsel %vm1086_vm4, %v3280_v30, %v3277_v55  ;;  %v3281_v59 = vld [vmem:[#allocation10_spill] sm:$0xff] }
 0x217   : > { %v3072_v37 = vadd.f32 %v1095_v35, %v2936_v57  ;;  %v1112_v34 = vadd.f32 %v1088_v49, %v986_v54  ;;  %v1340_v40 = vsel %vm1338_vm6, %v3283_v5, %v3281_v59  ;;  %v607_v54 = vmul.f32 %v2299_v63, %v2327_v22  ;;  %v3290_v22 = vld [vmem:[#allocation12_spill] sm:$0xff] }
 0x218   : > { %v1321_v2 = vpop.permute.xlu1 %1320 }
 0x219   : > { %v1344_v26 = vsel %vm1338_vm6, %v2751_v17, %v1321_v2  ;;  %v1313_v62 = vpop.permute.xlu0 %1312  ;;  %v1238_v52 = vadd.f32 %v1214_v32, %v1112_v34  ;;  %v3289_v32 = vld [vmem:[#allocation7_spill] sm:$0xff] }
 0x21a   : > { %v3080_v3 = vadd.f32 %v1344_v26, %v2841_v48  ;;  %v1341_v15 = vsel %vm1338_vm6, %v3281_v59, %v1313_v62  ;;  %v733_v62 = vadd.f32 %v709_v18, %v607_v54  ;;  %v3288_v59 = vld [vmem:[#allocation6_spill] sm:$0xff]  ;;  %v1087_v56 = vsel %vm1086_vm4, %v3289_v32, %v3280_v30  ;;  %v3291_v30 = vld [vmem:[#allocation13_spill] sm:$0xff] }
 0x21b   : > { %v3084_v57 = vadd.f32 %v1341_v15, %v1239_v50  ;;  %v1364_v39 = vadd.f32 %v1340_v40, %v1238_v52  ;;  %v835_v50 = vsel %vm834_vm2, %v3287_v10, %v3274_v41  ;;  %v961_v15 = vsel %vm960_vm3, %v3288_v59, %v3275_v24 }
 0x21c   : > { %v3086_v27 = vpop.permute.xlu1 %1326  ;;  %v859_v34 = vadd.f32 %v835_v50, %v733_v62  ;;  %v1213_v41 = vsel %vm1212_vm5, %v3290_v22, %v3282_v13  ;;  %v1468_v24 = vsel %vm1464_vm8, %v3041_v7, %v3023_v14  ;;  %v1339_v0 = vsel %vm1338_vm6, %v3291_v30, %v3283_v5 }
 0x21d   : > { %v1325_v53 = vpop.permute.xlu0 %1324  ;;  %v1490_v43 = vadd.f32 %v1466_v47, %v1364_v39  ;;  %v1492_v14 = vadd.f32 %v1468_v24, %v2848_v23 }
 0x21e   : > { %v1346_v17 = vsel %vm1338_vm6, %v1325_v53, %v3086_v27 }
 0x21f   : > { %v3094_v48 = vadd.f32 %v1346_v17, %v2951_v4  ;;  %v985_v17 = vadd.f32 %v961_v15, %v859_v34 }
 0x220   : > { %v3096_v19 = vpop.permute.xlu1 %1334 }
 0x221   : > { %v1333_v36 = vpop.permute.xlu0 %1332  ;;  %v1111_v52 = vadd.f32 %v1087_v56, %v985_v17 }
 0x222   : > { %v1349_v38 = vsel %vm1338_vm6, %v1333_v36, %v3096_v19 }
 0x223   : > { %v3106_v9 = vadd.f32 %v1349_v38, %v1247_v46  ;;  %v1237_v47 = vadd.f32 %v1213_v41, %v1111_v52 }
 0x224   : > { %v3108_v4 = vpop.permute.xlu1 %1562 }
 0x225   : > { %v1561_v29 = vpop.permute.xlu0 %1560 }
 0x226   : > { %v1592_v61 = vsel %vm1590_vm9, %v1561_v29, %v3108_v4 }
 0x227   : > { %v1616_v25 = vadd.f32 %v1592_v61, %v1490_v43  ;;  %v1465_v61 = vsel %vm1464_vm8, %v3043_v28, %v3019_v16 }
 0x228   : > { %v3115_v45 = vpop.permute.xlu1 %1570 }
 0x229   : > { %v1569_v55 = vpop.permute.xlu0 %1568  ;;  %v1652_v42 = vadd.f32 %v3284_v31, %v1616_v25 }
 0x22a   : > { %v1595_v46 = vsel %vm1590_vm9, %v1569_v55, %v3115_v45 }
 0x22b   : > { %v1619_v44 = vadd.f32 %v1595_v46, %v1493_v11  ;;  %v1664_v49 = vmax.f32 %v1652_v42, 0.0  ;;  %v1363_v11 = vadd.f32 %v1339_v0, %v1237_v47 }
 0x22d   : > { %v1655_v35 = vadd.f32 %v3285_v51, %v1619_v44 }
 0x22f   : > { %v1667_v2 = vmax.f32 %v1655_v35, 0.0 }
 0x231   : > { %v2002_v26 = vpack.c.bf16 %v1667_v2, %v1664_v49 }
 0x233   : > { %2003 = vmatprep.subr.bf16.mxu0 %v2002_v26 }
 0x239   : > { %v3136_v40 = vpop.permute.xlu1 %1648 }
 0x23a   : > { %v3138_v63 = vpop.permute.xlu0 %1643 }
 0x23d   : > { %v1331_v38 = vpop.permute.xlu1 %1330 }
 0x23e   : > { %v1348_v39 = vsel %vm1338_vm6, %v1331_v38, %v1333_v36  ;;  %v1323_v43 = vpop.permute.xlu0 %1322  ;;  %v1489_v36 = vadd.f32 %v1465_v61, %v1363_v11 }
 0x23f   : > { %v3154_v25 = vadd.f32 %v1348_v39, %v3034_v20  ;;  %v1345_v13 = vsel %vm1338_vm6, %v1323_v43, %v1325_v53 }
 0x240   : > { %v3158_v46 = vadd.f32 %v1345_v13, %v3039_v33 }
 0x241   : > { %v1567_v7 = vpop.permute.xlu1 %1566 }
 0x242   : > { %v1594_v42 = vsel %vm1590_vm9, %v1567_v7, %v1569_v55  ;;  %v1559_v5 = vpop.permute.xlu0 %1558 }
 0x243   : > { %v1618_v44 = vadd.f32 %v1594_v42, %v1492_v14  ;;  %v1591_v35 = vsel %vm1590_vm9, %v1559_v5, %v1561_v29 }
 0x244   : > { %v1615_v16 = vadd.f32 %v1591_v35, %v1489_v36 }
 0x245   : > { %v1654_v20 = vadd.f32 %v3285_v51, %v1618_v44  ;;  %v1211_v28 = vpop.permute.xlu1 %1210 }
 0x246   : > { %v1651_v53 = vadd.f32 %v3284_v31, %v1615_v16  ;;  %v1203_v60 = vpop.permute.xlu0 %1202  ;;  %v1224_v59 = vsel %vm1212_vm5, %v2960_v21, %v1211_v28 }
 0x247   : > { %v1666_v18 = vmax.f32 %v1654_v20, 0.0  ;;  %v1221_v34 = vsel %vm1212_vm5, %v2875_v12, %v1203_v60  ;;  %v1248_v32 = vadd.f32 %v1224_v59, %v3067_v6 }
 0x248   : > { %v1663_v33 = vmax.f32 %v1651_v53, 0.0  ;;  %v1245_v56 = vadd.f32 %v1221_v34, %v3072_v37 }
 0x249   : > { %v1447_v49 = vpop.permute.xlu1 %1446 }
 0x24a   : > { %v2004_v2 = vpack.c.bf16 %v1666_v18, %v1663_v33  ;;  %v1470_v23 = vsel %vm1464_vm8, %v3021_v8, %v1447_v49  ;;  %v1439_v54 = vpop.permute.xlu0 %1438 }
 0x24b   : > { %v1494_v55 = vadd.f32 %v1470_v23, %v3080_v3  ;;  %v1467_v52 = vsel %vm1464_vm8, %v3017_v58, %v1439_v54 }
 0x24c   : > { %2005 = vmatpush1.bf16.msra.mxu0 %v2004_v2  ;;  %v1491_v12 = vadd.f32 %v1467_v52, %v3084_v57 }
 0x24d   : > { %v3168_v10 = vpop.permute.xlu1 %1452 }
 0x24e   : > { %v1451_v29 = vpop.permute.xlu0 %1450 }
 0x24f   : > { %v1472_v37 = vsel %vm1464_vm8, %v1451_v29, %v3168_v10 }
 0x251   : > { %v1461_v50 = vpop.permute.xlu1 %1460 }
 0x252   : > { %v1459_v26 = vpop.permute.xlu0 %1458 }
 0x253   : > { %v1475_v0 = vsel %vm1464_vm8, %v1459_v26, %v1461_v50 }
 0x254   : > { %v1499_v7 = vadd.f32 %v1475_v0, %v3106_v9 }
 0x255   : > { %v1457_v62 = vpop.permute.xlu1 %1456 }
 0x256   : > { %v1449_v15 = vpop.permute.xlu0 %1448 }
 0x257   : > { %v1471_v42 = vsel %vm1464_vm8, %v1449_v15, %v1451_v29 }
 0x258   : > { %v1495_v16 = vadd.f32 %v1471_v42, %v3158_v46 }
 0x259   : > { %v1337_v8 = vpop.permute.xlu1 %1336 }
 0x25a   : > { %v1350_v3 = vsel %vm1338_vm6, %v3096_v19, %v1337_v8  ;;  %v1329_v17 = vpop.permute.xlu0 %1328 }
 0x25b   : > { %v1374_v22 = vadd.f32 %v1350_v3, %v1248_v32  ;;  %v1347_v21 = vsel %vm1338_vm6, %v3086_v27, %v1329_v17  ;;  %v1496_v27 = vadd.f32 %v1472_v37, %v3094_v48 }
 0x25c   : > { %v1371_v41 = vadd.f32 %v1347_v21, %v1245_v56 }
 0x25d   : > { %v1573_v47 = vpop.permute.xlu1 %1572 }
 0x25e   : > { %v1596_v6 = vsel %vm1590_vm9, %v3115_v45, %v1573_v47  ;;  %v1565_v38 = vpop.permute.xlu0 %1564 }
 0x25f   : > { %v1620_v19 = vadd.f32 %v1596_v6, %v1494_v55  ;;  %v1593_v24 = vsel %vm1590_vm9, %v3108_v4, %v1565_v38  ;;  %v1474_v4 = vsel %vm1464_vm8, %v1457_v62, %v1459_v26 }
 0x260   : > { %v1617_v58 = vadd.f32 %v1593_v24, %v1491_v12  ;;  %v1498_v44 = vadd.f32 %v1474_v4, %v3154_v25  ;;  %v1694_v24 = vld [vmem:[%s3237_s6 + $0x8] sm:$0xff] }
 0x261   : > { %v1656_v39 = vadd.f32 %v3285_v51, %v1620_v19  ;;  %v1579_v43 = vpop.permute.xlu1 %1578 }
 0x262   : > { %v1653_v30 = vadd.f32 %v3284_v31, %v1617_v58  ;;  %v1577_v57 = vpop.permute.xlu0 %1576 }
 0x263   : > { %v1668_v45 = vmax.f32 %v1656_v39, 0.0  ;;  %v1598_v61 = vsel %vm1590_vm9, %v1577_v57, %v1579_v43 }
 0x264   : > { %v1665_v13 = vmax.f32 %v1653_v30, 0.0  ;;  %v1622_v11 = vadd.f32 %v1598_v61, %v1496_v27 }
 0x265   : > { %v1587_v14 = vpop.permute.xlu1 %1586 }
 0x266   : > { %v1585_v36 = vpop.permute.xlu0 %1584  ;;  %v2010_v51 = vpack.c.bf16 %v1668_v45, %v1665_v13  ;;  %v1658_v31 = vadd.f32 %v3138_v63, %v1622_v11 }
 0x267   : > { %v1601_v48 = vsel %vm1590_vm9, %v1585_v36, %v1587_v14 }
 0x268   : > { %v1625_v5 = vadd.f32 %v1601_v48, %v1499_v7  ;;  %2011 = vmatprep.subr.bf16.mxu1 %v2010_v51  ;;  %v1670_v18 = vmax.f32 %v1658_v31, 0.0 }
 0x269   : > { %2013 = vmatpush3.bf16.msra.mxu1 %v2010_v51  ;;  %v1583_v35 = vpop.permute.xlu1 %1582 }
 0x26a   : > { %v1661_v9 = vadd.f32 %v3136_v40, %v1625_v5  ;;  %v1600_v20 = vsel %vm1590_vm9, %v1583_v35, %v1585_v36  ;;  %v1575_v28 = vpop.permute.xlu0 %1574 }
 0x26b   : > { %v1624_v53 = vadd.f32 %v1600_v20, %v1498_v44  ;;  %v1597_v60 = vsel %vm1590_vm9, %v1575_v28, %v1577_v57 }
 0x26c   : > { %v1673_v33 = vmax.f32 %v1661_v9, 0.0  ;;  %v1621_v49 = vadd.f32 %v1597_v60, %v1495_v16 }
 0x26d   : > { %v1660_v2 = vadd.f32 %v3136_v40, %v1624_v53  ;;  %v1463_v23 = vpop.permute.xlu1 %1462 }
 0x26e   : > { %v1657_v25 = vadd.f32 %v3138_v63, %v1621_v49  ;;  %v1476_v54 = vsel %vm1464_vm8, %v1461_v50, %v1463_v23  ;;  %v1455_v55 = vpop.permute.xlu0 %1454  ;;  %v2006_v46 = vpack.c.bf16 %v1673_v33, %v1670_v18 }
 0x26f   : > { %v1672_v29 = vmax.f32 %v1660_v2, 0.0  ;;  %v1473_v26 = vsel %vm1464_vm8, %v3168_v10, %v1455_v55  ;;  %v1500_v59 = vadd.f32 %v1476_v54, %v1374_v22 }
 0x270   : > { %v1669_v62 = vmax.f32 %v1657_v25, 0.0  ;;  %2007 = vmatprep.subr.bf16.mxu0 %v2006_v46  ;;  %v1497_v32 = vadd.f32 %v1473_v26, %v1371_v41 }
 0x271   : > { %v1589_v15 = vpop.permute.xlu1 %1588 }
 0x272   : > { %v2008_v34 = vpack.c.bf16 %v1672_v29, %v1669_v62  ;;  %v1602_v8 = vsel %vm1590_vm9, %v1587_v14, %v1589_v15  ;;  %v1581_v56 = vpop.permute.xlu0 %1580 }
 0x273   : > { %v1626_v3 = vadd.f32 %v1602_v8, %v1500_v59  ;;  %v1599_v17 = vsel %vm1590_vm9, %v1579_v43, %v1581_v56 }
 0x274   : > { %v1623_v52 = vadd.f32 %v1599_v17, %v1497_v32  ;;  %2009 = vmatpush1.bf16.msra.mxu0 %v2008_v34 }
 0x275   : > { %v1662_v50 = vadd.f32 %v3136_v40, %v1626_v3  ;;  %v1684_v21 = vpop.permute.xlu1 %1683 }
 0x276   : > { %v1659_v47 = vadd.f32 %v3138_v63, %v1623_v52  ;;  %v1682_v10 = vpop.permute.xlu0 %1681  ;;  %v3292_v63 = vmov 0.0  }
 0x277   : > { %v1674_v12 = vmax.f32 %v1662_v50, 0.0  ;;  %v1688_v22 = vsel %vm1086_vm4, %v1682_v10, %v1684_v21 }
 0x278   : > { %v1671_v6 = vmax.f32 %v1659_v47, 0.0  ;;  %1722 = vmatprep.subr.mxu0 %v1688_v22 }
 0x279   : > { %v1686_v41 = vpop.permute.xlu1 %1685 }
 0x27a   : > { %v1680_v38 = vpop.permute.xlu0 %1679  ;;  %v2014_v37 = vpack.c.bf16 %v1674_v12, %v1671_v6  ;;  %v1689_v40 = vsel %vm1086_vm4, %v1684_v21, %v1686_v41 }
 0x27b   : > { %v1687_v19 = vsel %vm1086_vm4, %v1680_v38, %v1682_v10 }
 0x27c   : > { %1723 = vmatpush1.msra.mxu0 %v1687_v19  ;;  %2015 = vmatprep.subr.bf16.mxu1 %v2014_v37 }
 0x27d   : > { %1975 = vmatmul.mubr.msk.f32.vlgmr.msra.gmra.mrb[8].mxu0 %vm1707_vm7, %v3005_v1  ;;  %2017 = vmatpush3.bf16.msra.mxu1 %v2014_v37  ;;  %v1705_v30 = vpop.permute.xlu1 %1704 }
 0x27e   : > { %1997 = vmatprep.subr.mxu1 %v1689_v40  ;;  %1784 = vmatprep.mubr.f32.mxu0 %v3292_v63  ;;  %v1700_v1 = vpop.permute.xlu0 %1699 }
 0x281   : > { %1976 = vmatmul.mubr.msk.f32.gmra.mrb[10].mxu0 %vm1707_vm7, %v1694_v24  ;;  %1998 = vmatpush3.msra.mxu1 %v1689_v40 }
 0x282   : > { %2000 = vmatmul.mubr.msk.f32.vlgmr.msra.gmra.mrb[8].mxu1 %vm1707_vm7, %v1694_v24 }
 0x350   : > { %v1780_v58 = vpop.f32.mrb[8].mxu0 }
 0x351   : > { %v1781_v39 = vadd.f32 %v1780_v58, %v1700_v1  ;;  %v1782_v43 = vpop.f32.mrb[9].mxu0 }
 0x352   : > { %v1783_v27 = vadd.f32 %v1782_v43, %v1700_v1 }
 0x353   : > { %1866 = vst [vmem:[%s305_s12] sm:$0xff] %v1781_v39 }
 0x354   : > { %1867 = vst [vmem:[%s305_s12 + $0x8] sm:$0xff] %v1783_v27  ;;  %v1786_v57 = vpop.f32.mrb[10].mxu0 }
 0x355   : > { %v1787_v0 = vadd.f32 %v1786_v57, %v1705_v30  ;;  %v1788_v45 = vpop.f32.mrb[11].mxu0  ;;  %v2001_v61 = vpop.f32.mrb[8].mxu1 }
 0x356   : > { %v1789_v13 = vadd.f32 %v1788_v45, %v1705_v30  ;;  %v1863_v11 = vadd.f32 %v2001_v61, %v1705_v30  ;;  %v1857_v14 = vpop.f32.mrb[9].mxu1 }
 0x357   : > { %1869 = vst [vmem:[%s305_s12 + $0x18] sm:$0xff] %v1787_v0  ;;  %v1858_v7 = vadd.f32 %v1857_v14, %v1700_v1 }
 0x358   : > { %1870 = vst [vmem:[%s305_s12 + $0x20] sm:$0xff] %v1789_v13  ;;  %1871 = vst [vmem:[%s305_s12 + $0x28] sm:$0xff] %v1863_v11 }
 0x359   : > { %1868 = vst [vmem:[%s305_s12 + $0x10] sm:$0xff] %v1858_v7 }
 0x35a PF: > { %s18_s27 = sadd.s32 1, %s2049_s27  }
 0x35b   : > { %p15_p4 = scmp.ge.s32.totalorder %s18_s27, 6  }
 0x35d   :  { %17 = sbr.rel (!%p15_p4) target bundleno = 1 (0x1), region = 90 }

</bundles_post_ra>
